<compile_context>
chip_gen: v6e
topology: v6e:2x2x1
jax: 0.10.0
libtpu: 0.0.40
codegen_flags: <defaults>
</compile_context>

<pallas_src>
import functools
import math

import jax
import jax.numpy as jnp
from jax import lax
from jax.experimental import pallas as pl
from jax.experimental.pallas import tpu as pltpu

BF16 = jnp.bfloat16
F32 = jnp.float32


# ----------------------------- kernel helpers -------------------------------

def _mm(x, w):
    """bf16 MXU matmul with f32 accumulation.  x: (m, k), w: (k, n) bf16."""
    return jnp.dot(x.astype(BF16), w, preferred_element_type=F32)


def _layer_norm(x, w, b, eps=1e-5):
    mu = jnp.mean(x, axis=-1, keepdims=True)
    var = jnp.mean((x - mu) ** 2, axis=-1, keepdims=True)
    return (x - mu) * lax.rsqrt(var + eps) * w + b


def _silu(x):
    # x * sigmoid(x); the divide goes through the (idle) EUP reciprocal.
    return x * pl.reciprocal(1.0 + jnp.exp(-x), approx=True)


def _softmax_last(x):
    m = jnp.max(x, axis=-1, keepdims=True)
    e = jnp.exp(x - m)
    return e * pl.reciprocal(jnp.sum(e, axis=-1, keepdims=True), approx=True)


# ------------------------------- the kernel ---------------------------------

def _model_kernel(num_head, num_seqs, norm_first,
                  src_ref,
                  emb_wt_ref, emb_b_ref,
                  wq_ref, bq_ref, wk_ref, bk_ref, wv_ref, bv_ref,
                  wo_ref, outproj_b_ref,
                  n1_w_ref, n1_b_ref, n2_w_ref, n2_b_ref,
                  ff1_wt_ref, ff1_b_ref, ff2_wt_ref, ff2_b_ref,
                  fc1_w3_ref, fc1_b_ref, fc2_wt_ref, fc2_b_ref,
                  fc3_wt_ref, fc3_b_ref,
                  out_ref):
    # embedding_layer: (S, seq_length) -> (S, d)
    x = src_ref[...]                                         # f32
    h = _mm(x, emb_wt_ref[...]) + emb_b_ref[...]             # f32 (S, d)

    # --- TransformerEncoderLayer (eval mode: all dropouts are identity) ---
    def mha(xin):
        x_bf = xin.astype(BF16)                              # hoisted cast
        o = None
        for hix in range(num_head):                          # static unroll
            # per-head projections straight from per-head weight blocks
            # (scale 1/sqrt(hd) already folded into wq/bq on the host)
            q = _mm(x_bf, wq_ref[hix]) + bq_ref[hix]         # (S, hd) f32
            k = _mm(x_bf, wk_ref[hix]) + bk_ref[hix]
            v = _mm(x_bf, wv_ref[hix]) + bv_ref[hix]
            scores = lax.dot_general(                        # q @ k^T, (S, S)
                q.astype(BF16), k.astype(BF16),
                (((1,), (1,)), ((), ())),
                preferred_element_type=F32)
            attn = _softmax_last(scores)                     # f32 (S, S)
            ctx = jnp.dot(attn.astype(BF16), v.astype(BF16),
                          preferred_element_type=F32)        # (S, hd)
            contrib = _mm(ctx, wo_ref[hix])                  # (S, d)
            o = contrib if o is None else o + contrib
        return o + outproj_b_ref[...]

    def ffn(xin):
        t = _mm(xin, ff1_wt_ref[...]) + ff1_b_ref[...]       # (S, dff)
        t = jnp.maximum(t, 0.0)    # relu (TransformerEncoderLayer default)
        return _mm(t, ff2_wt_ref[...]) + ff2_b_ref[...]      # (S, d)

    if norm_first:
        h = h + mha(_layer_norm(h, n1_w_ref[...], n1_b_ref[...]))
        h = h + ffn(_layer_norm(h, n2_w_ref[...], n2_b_ref[...]))
    else:
        h = _layer_norm(h + mha(h), n1_w_ref[...], n1_b_ref[...])
        h = _layer_norm(h + ffn(h), n2_w_ref[...], n2_b_ref[...])

    # fc1 on the row-major flatten of (S, d) -> (1, S*d).  Implemented as a
    # short static accumulation over host-pre-split (d, d) weight blocks
    # (avoids any in-kernel reshape/relayout or weight slicing).
    acc = fc1_b_ref[...]                                     # (1, d) f32
    for s in range(num_seqs):                                # static unroll
        acc = acc + _mm(h[s:s + 1, :], fc1_w3_ref[s])        # (1, d)
    y = _silu(acc)

    # TODO(synk): nn.Dropout and the torch.tensor(clone/detach) wrapper are
    # identity at inference; nothing to translate for value semantics.
    y = _silu(_mm(y, fc2_wt_ref[...]) + fc2_b_ref[...])      # (1, d//2)
    out_ref[...] = _mm(y, fc3_wt_ref[...]) + fc3_b_ref[...]  # (1, seq_length)


# ------------------------------- host wrapper --------------------------------

PREP_ORDER = [
    "emb_wt", "emb_b",
    "wq", "bq", "wk", "bk", "wv", "bv", "wo", "outproj_b",
    "n1_w", "n1_b", "n2_w", "n2_b",
    "ff1_wt", "ff1_b", "ff2_wt", "ff2_b",
    "fc1_w3", "fc1_b", "fc2_wt", "fc2_b", "fc3_wt", "fc3_b",
]


def transformer_no_decode_forward(src, params, *, num_head, num_seqs, norm_first):
    seq_length = src.shape[-1]
    args = [src] + [params[k] for k in PREP_ORDER]

    def full_spec(shape):
        nd = len(shape)
        return pl.BlockSpec(shape, lambda *_: (0,) * nd)

    kernel = functools.partial(_model_kernel, num_head, num_seqs, norm_first)
    return pl.pallas_call(
        kernel,
        out_shape=jax.ShapeDtypeStruct((1, seq_length), F32),
        grid=(1,),
        in_specs=[full_spec(a.shape) for a in args],
        out_specs=full_spec((1, seq_length)),
        compiler_params=pltpu.CompilerParams(
            dimension_semantics=("arbitrary",),
            # Headroom if this kernel is reused with larger d / num_seqs /
            # dim_feedforward; current footprint is well under 1 MiB.
            vmem_limit_bytes=32 * 1024 * 1024,
        ),
    )(*args)


# ---------------------- PyTorch-layout params + host prep --------------------

def init_params(key, num_features, seq_length, num_seqs, dim_feedforward=2048):
    """Deterministic PyTorch-Linear-style init (uniform +/- 1/sqrt(fan_in)),
    in the native PyTorch (out_features, in_features) layout."""
    d = num_features

    def lin(k, out_f, in_f):
        kw, kb = jax.random.split(k)
        bound = 1.0 / math.sqrt(in_f)
        w = jax.random.uniform(kw, (out_f, in_f), F32, -bound, bound)
        b = jax.random.uniform(kb, (1, out_f), F32, -bound, bound)
        return w, b

    keys = jax.random.split(key, 8)
    emb_w, emb_b = lin(keys[0], d, seq_length)
    inproj_w, inproj_b = lin(keys[1], 3 * d, d)
    outproj_w, outproj_b = lin(keys[2], d, d)
    ff1_w, ff1_b = lin(keys[3], dim_feedforward, d)
    ff2_w, ff2_b = lin(keys[4], d, dim_feedforward)
    fc1_w, fc1_b = lin(keys[5], d, d * num_seqs)
    fc2_w, fc2_b = lin(keys[6], d // 2, d)
    fc3_w, fc3_b = lin(keys[7], seq_length, d // 2)

    return dict(
        emb_w=emb_w, emb_b=emb_b,
        inproj_w=inproj_w, inproj_b=inproj_b,
        outproj_w=outproj_w, outproj_b=outproj_b,
        n1_w=jnp.ones((1, d), F32), n1_b=jnp.zeros((1, d), F32),
        n2_w=jnp.ones((1, d), F32), n2_b=jnp.zeros((1, d), F32),
        ff1_w=ff1_w, ff1_b=ff1_b, ff2_w=ff2_w, ff2_b=ff2_b,
        fc1_w=fc1_w, fc1_b=fc1_b, fc2_w=fc2_w, fc2_b=fc2_b,
        fc3_w=fc3_w, fc3_b=fc3_b,
    )


def prepare_params(p, *, num_head, num_seqs):
    """Host-side re-layout of PyTorch (out,in) weights:
       * transpose every Linear weight to (in, out) and cast to bf16,
       * split in_proj / out_proj into per-head blocks (scale folded into Wq/bq),
       * split fc1 into per-sequence-position (d, d) blocks.
    Biases and LayerNorm affine params stay f32."""
    d = p["emb_w"].shape[0]
    hd = d // num_head
    scale = 1.0 / math.sqrt(hd)

    def t_bf(w):
        return jnp.asarray(w).T.astype(BF16)

    inproj_w = p["inproj_w"]                     # (3d, d)
    inproj_b = p["inproj_b"].reshape(3 * d)      # (3d,)
    wq_t = inproj_w[0:d].T                       # (d, d) (in, out)
    wk_t = inproj_w[d:2 * d].T
    wv_t = inproj_w[2 * d:3 * d].T
    bq = inproj_b[0:d]
    bk = inproj_b[d:2 * d]
    bv = inproj_b[2 * d:3 * d]

    def split_w(w_t):                            # (d, d) -> (H, d, hd)
        return jnp.stack([w_t[:, h * hd:(h + 1) * hd] for h in range(num_head)], 0)

    def split_b(b):                              # (d,) -> (H, 1, hd)
        return jnp.stack([b[h * hd:(h + 1) * hd].reshape(1, hd)
                          for h in range(num_head)], 0)

    wo = p["outproj_w"]                          # (d, d) (out, in)
    wo_h = jnp.stack([wo[:, h * hd:(h + 1) * hd].T for h in range(num_head)], 0)

    fc1_w3 = p["fc1_w"].T.reshape(num_seqs, d, d)   # row-major flatten blocks

    return dict(
        emb_wt=t_bf(p["emb_w"]), emb_b=p["emb_b"].astype(F32),
        wq=(split_w(wq_t) * scale).astype(BF16), bq=(split_b(bq) * scale).astype(F32),
        wk=split_w(wk_t).astype(BF16), bk=split_b(bk).astype(F32),
        wv=split_w(wv_t).astype(BF16), bv=split_b(bv).astype(F32),
        wo=wo_h.astype(BF16), outproj_b=p["outproj_b"].astype(F32),
        n1_w=p["n1_w"].astype(F32), n1_b=p["n1_b"].astype(F32),
        n2_w=p["n2_w"].astype(F32), n2_b=p["n2_b"].astype(F32),
        ff1_wt=t_bf(p["ff1_w"]), ff1_b=p["ff1_b"].astype(F32),
        ff2_wt=t_bf(p["ff2_w"]), ff2_b=p["ff2_b"].astype(F32),
        fc1_w3=fc1_w3.astype(BF16), fc1_b=p["fc1_b"].astype(F32),
        fc2_wt=t_bf(p["fc2_w"]), fc2_b=p["fc2_b"].astype(F32),
        fc3_wt=t_bf(p["fc3_w"]), fc3_b=p["fc3_b"].astype(F32),
    )


if __name__ == "__main__":
    # Small hyper-parameters consistent with the module's __init__.
    num_features = 32
    num_head = 4
    seq_length = 8
    num_seqs = 5
    norm_first = False        # dropout_p unused at inference (identity)

    key = jax.random.PRNGKey(0)
    ksrc, kparams = jax.random.split(key)
    src = jax.random.normal(ksrc, (num_seqs, seq_length), F32)

    torch_layout_params = init_params(kparams, num_features, seq_length, num_seqs)
    params = prepare_params(torch_layout_params, num_head=num_head, num_seqs=num_seqs)

    out = transformer_no_decode_forward(
        src, params, num_head=num_head, num_seqs=num_seqs, norm_first=norm_first)
    jax.block_until_ready(out)
    assert out.shape == (1, seq_length) and out.dtype == F32
    print("KERNEL_OK")
</pallas_src>

<mosaic_0001>
module attributes {stable_mosaic.version = 11 : i64} {
  func.func @_model_kernel(%arg0: i32, %arg1: memref<5x8xf32, #tpu.memory_space<vmem>>, %arg2: memref<8x32xbf16, #tpu.memory_space<vmem>>, %arg3: memref<1x32xf32, #tpu.memory_space<vmem>>, %arg4: memref<4x32x8xbf16, #tpu.memory_space<vmem>>, %arg5: memref<4x1x8xf32, #tpu.memory_space<vmem>>, %arg6: memref<4x32x8xbf16, #tpu.memory_space<vmem>>, %arg7: memref<4x1x8xf32, #tpu.memory_space<vmem>>, %arg8: memref<4x32x8xbf16, #tpu.memory_space<vmem>>, %arg9: memref<4x1x8xf32, #tpu.memory_space<vmem>>, %arg10: memref<4x8x32xbf16, #tpu.memory_space<vmem>>, %arg11: memref<1x32xf32, #tpu.memory_space<vmem>>, %arg12: memref<1x32xf32, #tpu.memory_space<vmem>>, %arg13: memref<1x32xf32, #tpu.memory_space<vmem>>, %arg14: memref<1x32xf32, #tpu.memory_space<vmem>>, %arg15: memref<1x32xf32, #tpu.memory_space<vmem>>, %arg16: memref<32x2048xbf16, #tpu.memory_space<vmem>>, %arg17: memref<1x2048xf32, #tpu.memory_space<vmem>>, %arg18: memref<2048x32xbf16, #tpu.memory_space<vmem>>, %arg19: memref<1x32xf32, #tpu.memory_space<vmem>>, %arg20: memref<5x32x32xbf16, #tpu.memory_space<vmem>>, %arg21: memref<1x32xf32, #tpu.memory_space<vmem>>, %arg22: memref<32x16xbf16, #tpu.memory_space<vmem>>, %arg23: memref<1x16xf32, #tpu.memory_space<vmem>>, %arg24: memref<16x8xbf16, #tpu.memory_space<vmem>>, %arg25: memref<1x8xf32, #tpu.memory_space<vmem>>, %arg26: memref<1x8xf32, #tpu.memory_space<vmem>>) attributes {dimension_semantics = [#tpu.dimension_semantics<arbitrary>], iteration_bounds = array<i64: 1>, scalar_prefetch = 0 : i64, scratch_operands = 0 : i64, tpu.core_type = #tpu.core_type<tc>, window_params = [{pipeline_mode = #tpu.pipeline_mode<synchronous>, transform_indices = @transform_0, window_bounds = array<i64: 5, 8>}, {pipeline_mode = #tpu.pipeline_mode<synchronous>, transform_indices = @transform_1, window_bounds = array<i64: 8, 32>}, {pipeline_mode = #tpu.pipeline_mode<synchronous>, transform_indices = @transform_2, window_bounds = array<i64: 1, 32>}, {pipeline_mode = #tpu.pipeline_mode<synchronous>, transform_indices = @transform_3, window_bounds = array<i64: 4, 32, 8>}, {pipeline_mode = #tpu.pipeline_mode<synchronous>, transform_indices = @transform_4, window_bounds = array<i64: 4, 1, 8>}, {pipeline_mode = #tpu.pipeline_mode<synchronous>, transform_indices = @transform_5, window_bounds = array<i64: 4, 32, 8>}, {pipeline_mode = #tpu.pipeline_mode<synchronous>, transform_indices = @transform_6, window_bounds = array<i64: 4, 1, 8>}, {pipeline_mode = #tpu.pipeline_mode<synchronous>, transform_indices = @transform_7, window_bounds = array<i64: 4, 32, 8>}, {pipeline_mode = #tpu.pipeline_mode<synchronous>, transform_indices = @transform_8, window_bounds = array<i64: 4, 1, 8>}, {pipeline_mode = #tpu.pipeline_mode<synchronous>, transform_indices = @transform_9, window_bounds = array<i64: 4, 8, 32>}, {pipeline_mode = #tpu.pipeline_mode<synchronous>, transform_indices = @transform_10, window_bounds = array<i64: 1, 32>}, {pipeline_mode = #tpu.pipeline_mode<synchronous>, transform_indices = @transform_11, window_bounds = array<i64: 1, 32>}, {pipeline_mode = #tpu.pipeline_mode<synchronous>, transform_indices = @transform_12, window_bounds = array<i64: 1, 32>}, {pipeline_mode = #tpu.pipeline_mode<synchronous>, transform_indices = @transform_13, window_bounds = array<i64: 1, 32>}, {pipeline_mode = #tpu.pipeline_mode<synchronous>, transform_indices = @transform_14, window_bounds = array<i64: 1, 32>}, {pipeline_mode = #tpu.pipeline_mode<synchronous>, transform_indices = @transform_15, window_bounds = array<i64: 32, 2048>}, {pipeline_mode = #tpu.pipeline_mode<synchronous>, transform_indices = @transform_16, window_bounds = array<i64: 1, 2048>}, {pipeline_mode = #tpu.pipeline_mode<synchronous>, transform_indices = @transform_17, window_bounds = array<i64: 2048, 32>}, {pipeline_mode = #tpu.pipeline_mode<synchronous>, transform_indices = @transform_18, window_bounds = array<i64: 1, 32>}, {pipeline_mode = #tpu.pipeline_mode<synchronous>, transform_indices = @transform_19, window_bounds = array<i64: 5, 32, 32>}, {pipeline_mode = #tpu.pipeline_mode<synchronous>, transform_indices = @transform_20, window_bounds = array<i64: 1, 32>}, {pipeline_mode = #tpu.pipeline_mode<synchronous>, transform_indices = @transform_21, window_bounds = array<i64: 32, 16>}, {pipeline_mode = #tpu.pipeline_mode<synchronous>, transform_indices = @transform_22, window_bounds = array<i64: 1, 16>}, {pipeline_mode = #tpu.pipeline_mode<synchronous>, transform_indices = @transform_23, window_bounds = array<i64: 16, 8>}, {pipeline_mode = #tpu.pipeline_mode<synchronous>, transform_indices = @transform_24, window_bounds = array<i64: 1, 8>}, {pipeline_mode = #tpu.pipeline_mode<synchronous>, transform_indices = @transform_25, window_bounds = array<i64: 1, 8>}]} {
    %c0 = arith.constant 0 : index
    %c0_0 = arith.constant 0 : index
    %0 = vector.load %arg1[%c0, %c0_0] : memref<5x8xf32, #tpu.memory_space<vmem>>, vector<5x8xf32>
    %c0_1 = arith.constant 0 : index
    %c0_2 = arith.constant 0 : index
    %1 = vector.load %arg2[%c0_1, %c0_2] : memref<8x32xbf16, #tpu.memory_space<vmem>>, vector<8x32xbf16>
    %2 = arith.truncf %0 : vector<5x8xf32> to vector<5x8xbf16>
    %cst = arith.constant dense<0.000000e+00> : vector<5x32xf32>
    %3 = tpu.matmul %2, %1, %cst {dimension_numbers = #tpu.dot_dimension_numbers<[1], [0], [0], [1], [0, 0, 1, 1], [], []>} : vector<5x8xbf16>, vector<8x32xbf16>, vector<5x32xf32> -> vector<5x32xf32>
    %c0_3 = arith.constant 0 : index
    %c0_4 = arith.constant 0 : index
    %4 = vector.load %arg3[%c0_3, %c0_4] : memref<1x32xf32, #tpu.memory_space<vmem>>, vector<1x32xf32>
    %5 = vector.broadcast %4 : vector<1x32xf32> to vector<5x32xf32>
    %6 = arith.addf %3, %5 : vector<5x32xf32>
    %7 = arith.truncf %6 : vector<5x32xf32> to vector<5x32xbf16>
    %c0_5 = arith.constant 0 : index
    %c0_6 = arith.constant 0 : index
    %c0_7 = arith.constant 0 : index
    %8 = vector.load %arg4[%c0_5, %c0_6, %c0_7] : memref<4x32x8xbf16, #tpu.memory_space<vmem>>, vector<1x32x8xbf16>
    %9 = vector.shape_cast %8 : vector<1x32x8xbf16> to vector<32x8xbf16>
    %cst_8 = arith.constant dense<0.000000e+00> : vector<5x8xf32>
    %10 = tpu.matmul %7, %9, %cst_8 {dimension_numbers = #tpu.dot_dimension_numbers<[1], [0], [0], [1], [0, 0, 1, 1], [], []>} : vector<5x32xbf16>, vector<32x8xbf16>, vector<5x8xf32> -> vector<5x8xf32>
    %c0_9 = arith.constant 0 : index
    %c0_10 = arith.constant 0 : index
    %c0_11 = arith.constant 0 : index
    %11 = vector.load %arg5[%c0_9, %c0_10, %c0_11] : memref<4x1x8xf32, #tpu.memory_space<vmem>>, vector<1x1x8xf32>
    %12 = vector.shape_cast %11 : vector<1x1x8xf32> to vector<1x8xf32>
    %13 = vector.broadcast %12 : vector<1x8xf32> to vector<5x8xf32>
    %14 = arith.addf %10, %13 : vector<5x8xf32>
    %c0_12 = arith.constant 0 : index
    %c0_13 = arith.constant 0 : index
    %c0_14 = arith.constant 0 : index
    %15 = vector.load %arg6[%c0_12, %c0_13, %c0_14] : memref<4x32x8xbf16, #tpu.memory_space<vmem>>, vector<1x32x8xbf16>
    %16 = vector.shape_cast %15 : vector<1x32x8xbf16> to vector<32x8xbf16>
    %cst_15 = arith.constant dense<0.000000e+00> : vector<5x8xf32>
    %17 = tpu.matmul %7, %16, %cst_15 {dimension_numbers = #tpu.dot_dimension_numbers<[1], [0], [0], [1], [0, 0, 1, 1], [], []>} : vector<5x32xbf16>, vector<32x8xbf16>, vector<5x8xf32> -> vector<5x8xf32>
    %c0_16 = arith.constant 0 : index
    %c0_17 = arith.constant 0 : index
    %c0_18 = arith.constant 0 : index
    %18 = vector.load %arg7[%c0_16, %c0_17, %c0_18] : memref<4x1x8xf32, #tpu.memory_space<vmem>>, vector<1x1x8xf32>
    %19 = vector.shape_cast %18 : vector<1x1x8xf32> to vector<1x8xf32>
    %20 = vector.broadcast %19 : vector<1x8xf32> to vector<5x8xf32>
    %21 = arith.addf %17, %20 : vector<5x8xf32>
    %c0_19 = arith.constant 0 : index
    %c0_20 = arith.constant 0 : index
    %c0_21 = arith.constant 0 : index
    %22 = vector.load %arg8[%c0_19, %c0_20, %c0_21] : memref<4x32x8xbf16, #tpu.memory_space<vmem>>, vector<1x32x8xbf16>
    %23 = vector.shape_cast %22 : vector<1x32x8xbf16> to vector<32x8xbf16>
    %cst_22 = arith.constant dense<0.000000e+00> : vector<5x8xf32>
    %24 = tpu.matmul %7, %23, %cst_22 {dimension_numbers = #tpu.dot_dimension_numbers<[1], [0], [0], [1], [0, 0, 1, 1], [], []>} : vector<5x32xbf16>, vector<32x8xbf16>, vector<5x8xf32> -> vector<5x8xf32>
    %c0_23 = arith.constant 0 : index
    %c0_24 = arith.constant 0 : index
    %c0_25 = arith.constant 0 : index
    %25 = vector.load %arg9[%c0_23, %c0_24, %c0_25] : memref<4x1x8xf32, #tpu.memory_space<vmem>>, vector<1x1x8xf32>
    %26 = vector.shape_cast %25 : vector<1x1x8xf32> to vector<1x8xf32>
    %27 = vector.broadcast %26 : vector<1x8xf32> to vector<5x8xf32>
    %28 = arith.addf %24, %27 : vector<5x8xf32>
    %29 = arith.truncf %14 : vector<5x8xf32> to vector<5x8xbf16>
    %30 = arith.truncf %21 : vector<5x8xf32> to vector<5x8xbf16>
    %cst_26 = arith.constant dense<0.000000e+00> : vector<5x5xf32>
    %31 = tpu.matmul %29, %30, %cst_26 {dimension_numbers = #tpu.dot_dimension_numbers<[1], [1], [0], [0], [0, 0, 1, 0], [], []>} : vector<5x8xbf16>, vector<5x8xbf16>, vector<5x5xf32> -> vector<5x5xf32>
    %cst_27 = arith.constant dense<0xFF800000> : vector<5xf32>
    %32 = vector.multi_reduction <maximumf>, %31, %cst_27 [1] : vector<5x5xf32> to vector<5xf32>
    %33 = vector.shape_cast %32 : vector<5xf32> to vector<5x1xf32>
    %34 = vector.broadcast %33 : vector<5x1xf32> to vector<5x5xf32>
    %35 = arith.subf %31, %34 : vector<5x5xf32>
    %36 = math.exp %35 : vector<5x5xf32>
    %cst_28 = arith.constant dense<0.000000e+00> : vector<5xf32>
    %37 = vector.multi_reduction <add>, %36, %cst_28 [1] : vector<5x5xf32> to vector<5xf32>
    %38 = vector.shape_cast %37 : vector<5xf32> to vector<5x1xf32>
    %39 = tpu.reciprocal %38 {approx = true} : vector<5x1xf32> -> vector<5x1xf32>
    %40 = vector.broadcast %39 : vector<5x1xf32> to vector<5x5xf32>
    %41 = arith.mulf %36, %40 : vector<5x5xf32>
    %42 = arith.truncf %41 : vector<5x5xf32> to vector<5x5xbf16>
    %43 = arith.truncf %28 : vector<5x8xf32> to vector<5x8xbf16>
    %cst_29 = arith.constant dense<0.000000e+00> : vector<5x8xf32>
    %44 = tpu.matmul %42, %43, %cst_29 {dimension_numbers = #tpu.dot_dimension_numbers<[1], [0], [0], [1], [0, 0, 1, 1], [], []>} : vector<5x5xbf16>, vector<5x8xbf16>, vector<5x8xf32> -> vector<5x8xf32>
    %c0_30 = arith.constant 0 : index
    %c0_31 = arith.constant 0 : index
    %c0_32 = arith.constant 0 : index
    %45 = vector.load %arg10[%c0_30, %c0_31, %c0_32] : memref<4x8x32xbf16, #tpu.memory_space<vmem>>, vector<1x8x32xbf16>
    %46 = vector.shape_cast %45 : vector<1x8x32xbf16> to vector<8x32xbf16>
    %47 = arith.truncf %44 : vector<5x8xf32> to vector<5x8xbf16>
    %cst_33 = arith.constant dense<0.000000e+00> : vector<5x32xf32>
    %48 = tpu.matmul %47, %46, %cst_33 {dimension_numbers = #tpu.dot_dimension_numbers<[1], [0], [0], [1], [0, 0, 1, 1], [], []>} : vector<5x8xbf16>, vector<8x32xbf16>, vector<5x32xf32> -> vector<5x32xf32>
    %c1 = arith.constant 1 : index
    %c0_34 = arith.constant 0 : index
    %c0_35 = arith.constant 0 : index
    %49 = vector.load %arg4[%c1, %c0_34, %c0_35] : memref<4x32x8xbf16, #tpu.memory_space<vmem>>, vector<1x32x8xbf16>
    %50 = vector.shape_cast %49 : vector<1x32x8xbf16> to vector<32x8xbf16>
    %cst_36 = arith.constant dense<0.000000e+00> : vector<5x8xf32>
    %51 = tpu.matmul %7, %50, %cst_36 {dimension_numbers = #tpu.dot_dimension_numbers<[1], [0], [0], [1], [0, 0, 1, 1], [], []>} : vector<5x32xbf16>, vector<32x8xbf16>, vector<5x8xf32> -> vector<5x8xf32>
    %c1_37 = arith.constant 1 : index
    %c0_38 = arith.constant 0 : index
    %c0_39 = arith.constant 0 : index
    %52 = vector.load %arg5[%c1_37, %c0_38, %c0_39] : memref<4x1x8xf32, #tpu.memory_space<vmem>>, vector<1x1x8xf32>
    %53 = vector.shape_cast %52 : vector<1x1x8xf32> to vector<1x8xf32>
    %54 = vector.broadcast %53 : vector<1x8xf32> to vector<5x8xf32>
    %55 = arith.addf %51, %54 : vector<5x8xf32>
    %c1_40 = arith.constant 1 : index
    %c0_41 = arith.constant 0 : index
    %c0_42 = arith.constant 0 : index
    %56 = vector.load %arg6[%c1_40, %c0_41, %c0_42] : memref<4x32x8xbf16, #tpu.memory_space<vmem>>, vector<1x32x8xbf16>
    %57 = vector.shape_cast %56 : vector<1x32x8xbf16> to vector<32x8xbf16>
    %cst_43 = arith.constant dense<0.000000e+00> : vector<5x8xf32>
    %58 = tpu.matmul %7, %57, %cst_43 {dimension_numbers = #tpu.dot_dimension_numbers<[1], [0], [0], [1], [0, 0, 1, 1], [], []>} : vector<5x32xbf16>, vector<32x8xbf16>, vector<5x8xf32> -> vector<5x8xf32>
    %c1_44 = arith.constant 1 : index
    %c0_45 = arith.constant 0 : index
    %c0_46 = arith.constant 0 : index
    %59 = vector.load %arg7[%c1_44, %c0_45, %c0_46] : memref<4x1x8xf32, #tpu.memory_space<vmem>>, vector<1x1x8xf32>
    %60 = vector.shape_cast %59 : vector<1x1x8xf32> to vector<1x8xf32>
    %61 = vector.broadcast %60 : vector<1x8xf32> to vector<5x8xf32>
    %62 = arith.addf %58, %61 : vector<5x8xf32>
    %c1_47 = arith.constant 1 : index
    %c0_48 = arith.constant 0 : index
    %c0_49 = arith.constant 0 : index
    %63 = vector.load %arg8[%c1_47, %c0_48, %c0_49] : memref<4x32x8xbf16, #tpu.memory_space<vmem>>, vector<1x32x8xbf16>
    %64 = vector.shape_cast %63 : vector<1x32x8xbf16> to vector<32x8xbf16>
    %cst_50 = arith.constant dense<0.000000e+00> : vector<5x8xf32>
    %65 = tpu.matmul %7, %64, %cst_50 {dimension_numbers = #tpu.dot_dimension_numbers<[1], [0], [0], [1], [0, 0, 1, 1], [], []>} : vector<5x32xbf16>, vector<32x8xbf16>, vector<5x8xf32> -> vector<5x8xf32>
    %c1_51 = arith.constant 1 : index
    %c0_52 = arith.constant 0 : index
    %c0_53 = arith.constant 0 : index
    %66 = vector.load %arg9[%c1_51, %c0_52, %c0_53] : memref<4x1x8xf32, #tpu.memory_space<vmem>>, vector<1x1x8xf32>
    %67 = vector.shape_cast %66 : vector<1x1x8xf32> to vector<1x8xf32>
    %68 = vector.broadcast %67 : vector<1x8xf32> to vector<5x8xf32>
    %69 = arith.addf %65, %68 : vector<5x8xf32>
    %70 = arith.truncf %55 : vector<5x8xf32> to vector<5x8xbf16>
    %71 = arith.truncf %62 : vector<5x8xf32> to vector<5x8xbf16>
    %cst_54 = arith.constant dense<0.000000e+00> : vector<5x5xf32>
    %72 = tpu.matmul %70, %71, %cst_54 {dimension_numbers = #tpu.dot_dimension_numbers<[1], [1], [0], [0], [0, 0, 1, 0], [], []>} : vector<5x8xbf16>, vector<5x8xbf16>, vector<5x5xf32> -> vector<5x5xf32>
    %cst_55 = arith.constant dense<0xFF800000> : vector<5xf32>
    %73 = vector.multi_reduction <maximumf>, %72, %cst_55 [1] : vector<5x5xf32> to vector<5xf32>
    %74 = vector.shape_cast %73 : vector<5xf32> to vector<5x1xf32>
    %75 = vector.broadcast %74 : vector<5x1xf32> to vector<5x5xf32>
    %76 = arith.subf %72, %75 : vector<5x5xf32>
    %77 = math.exp %76 : vector<5x5xf32>
    %cst_56 = arith.constant dense<0.000000e+00> : vector<5xf32>
    %78 = vector.multi_reduction <add>, %77, %cst_56 [1] : vector<5x5xf32> to vector<5xf32>
    %79 = vector.shape_cast %78 : vector<5xf32> to vector<5x1xf32>
    %80 = tpu.reciprocal %79 {approx = true} : vector<5x1xf32> -> vector<5x1xf32>
    %81 = vector.broadcast %80 : vector<5x1xf32> to vector<5x5xf32>
    %82 = arith.mulf %77, %81 : vector<5x5xf32>
    %83 = arith.truncf %82 : vector<5x5xf32> to vector<5x5xbf16>
    %84 = arith.truncf %69 : vector<5x8xf32> to vector<5x8xbf16>
    %cst_57 = arith.constant dense<0.000000e+00> : vector<5x8xf32>
    %85 = tpu.matmul %83, %84, %cst_57 {dimension_numbers = #tpu.dot_dimension_numbers<[1], [0], [0], [1], [0, 0, 1, 1], [], []>} : vector<5x5xbf16>, vector<5x8xbf16>, vector<5x8xf32> -> vector<5x8xf32>
    %c1_58 = arith.constant 1 : index
    %c0_59 = arith.constant 0 : index
    %c0_60 = arith.constant 0 : index
    %86 = vector.load %arg10[%c1_58, %c0_59, %c0_60] : memref<4x8x32xbf16, #tpu.memory_space<vmem>>, vector<1x8x32xbf16>
    %87 = vector.shape_cast %86 : vector<1x8x32xbf16> to vector<8x32xbf16>
    %88 = arith.truncf %85 : vector<5x8xf32> to vector<5x8xbf16>
    %cst_61 = arith.constant dense<0.000000e+00> : vector<5x32xf32>
    %89 = tpu.matmul %88, %87, %cst_61 {dimension_numbers = #tpu.dot_dimension_numbers<[1], [0], [0], [1], [0, 0, 1, 1], [], []>} : vector<5x8xbf16>, vector<8x32xbf16>, vector<5x32xf32> -> vector<5x32xf32>
    %90 = arith.addf %48, %89 : vector<5x32xf32>
    %c2 = arith.constant 2 : index
    %c0_62 = arith.constant 0 : index
    %c0_63 = arith.constant 0 : index
    %91 = vector.load %arg4[%c2, %c0_62, %c0_63] : memref<4x32x8xbf16, #tpu.memory_space<vmem>>, vector<1x32x8xbf16>
    %92 = vector.shape_cast %91 : vector<1x32x8xbf16> to vector<32x8xbf16>
    %cst_64 = arith.constant dense<0.000000e+00> : vector<5x8xf32>
    %93 = tpu.matmul %7, %92, %cst_64 {dimension_numbers = #tpu.dot_dimension_numbers<[1], [0], [0], [1], [0, 0, 1, 1], [], []>} : vector<5x32xbf16>, vector<32x8xbf16>, vector<5x8xf32> -> vector<5x8xf32>
    %c2_65 = arith.constant 2 : index
    %c0_66 = arith.constant 0 : index
    %c0_67 = arith.constant 0 : index
    %94 = vector.load %arg5[%c2_65, %c0_66, %c0_67] : memref<4x1x8xf32, #tpu.memory_space<vmem>>, vector<1x1x8xf32>
    %95 = vector.shape_cast %94 : vector<1x1x8xf32> to vector<1x8xf32>
    %96 = vector.broadcast %95 : vector<1x8xf32> to vector<5x8xf32>
    %97 = arith.addf %93, %96 : vector<5x8xf32>
    %c2_68 = arith.constant 2 : index
    %c0_69 = arith.constant 0 : index
    %c0_70 = arith.constant 0 : index
    %98 = vector.load %arg6[%c2_68, %c0_69, %c0_70] : memref<4x32x8xbf16, #tpu.memory_space<vmem>>, vector<1x32x8xbf16>
    %99 = vector.shape_cast %98 : vector<1x32x8xbf16> to vector<32x8xbf16>
    %cst_71 = arith.constant dense<0.000000e+00> : vector<5x8xf32>
    %100 = tpu.matmul %7, %99, %cst_71 {dimension_numbers = #tpu.dot_dimension_numbers<[1], [0], [0], [1], [0, 0, 1, 1], [], []>} : vector<5x32xbf16>, vector<32x8xbf16>, vector<5x8xf32> -> vector<5x8xf32>
    %c2_72 = arith.constant 2 : index
    %c0_73 = arith.constant 0 : index
    %c0_74 = arith.constant 0 : index
    %101 = vector.load %arg7[%c2_72, %c0_73, %c0_74] : memref<4x1x8xf32, #tpu.memory_space<vmem>>, vector<1x1x8xf32>
    %102 = vector.shape_cast %101 : vector<1x1x8xf32> to vector<1x8xf32>
    %103 = vector.broadcast %102 : vector<1x8xf32> to vector<5x8xf32>
    %104 = arith.addf %100, %103 : vector<5x8xf32>
    %c2_75 = arith.constant 2 : index
    %c0_76 = arith.constant 0 : index
    %c0_77 = arith.constant 0 : index
    %105 = vector.load %arg8[%c2_75, %c0_76, %c0_77] : memref<4x32x8xbf16, #tpu.memory_space<vmem>>, vector<1x32x8xbf16>
    %106 = vector.shape_cast %105 : vector<1x32x8xbf16> to vector<32x8xbf16>
    %cst_78 = arith.constant dense<0.000000e+00> : vector<5x8xf32>
    %107 = tpu.matmul %7, %106, %cst_78 {dimension_numbers = #tpu.dot_dimension_numbers<[1], [0], [0], [1], [0, 0, 1, 1], [], []>} : vector<5x32xbf16>, vector<32x8xbf16>, vector<5x8xf32> -> vector<5x8xf32>
    %c2_79 = arith.constant 2 : index
    %c0_80 = arith.constant 0 : index
    %c0_81 = arith.constant 0 : index
    %108 = vector.load %arg9[%c2_79, %c0_80, %c0_81] : memref<4x1x8xf32, #tpu.memory_space<vmem>>, vector<1x1x8xf32>
    %109 = vector.shape_cast %108 : vector<1x1x8xf32> to vector<1x8xf32>
    %110 = vector.broadcast %109 : vector<1x8xf32> to vector<5x8xf32>
    %111 = arith.addf %107, %110 : vector<5x8xf32>
    %112 = arith.truncf %97 : vector<5x8xf32> to vector<5x8xbf16>
    %113 = arith.truncf %104 : vector<5x8xf32> to vector<5x8xbf16>
    %cst_82 = arith.constant dense<0.000000e+00> : vector<5x5xf32>
    %114 = tpu.matmul %112, %113, %cst_82 {dimension_numbers = #tpu.dot_dimension_numbers<[1], [1], [0], [0], [0, 0, 1, 0], [], []>} : vector<5x8xbf16>, vector<5x8xbf16>, vector<5x5xf32> -> vector<5x5xf32>
    %cst_83 = arith.constant dense<0xFF800000> : vector<5xf32>
    %115 = vector.multi_reduction <maximumf>, %114, %cst_83 [1] : vector<5x5xf32> to vector<5xf32>
    %116 = vector.shape_cast %115 : vector<5xf32> to vector<5x1xf32>
    %117 = vector.broadcast %116 : vector<5x1xf32> to vector<5x5xf32>
    %118 = arith.subf %114, %117 : vector<5x5xf32>
    %119 = math.exp %118 : vector<5x5xf32>
    %cst_84 = arith.constant dense<0.000000e+00> : vector<5xf32>
    %120 = vector.multi_reduction <add>, %119, %cst_84 [1] : vector<5x5xf32> to vector<5xf32>
    %121 = vector.shape_cast %120 : vector<5xf32> to vector<5x1xf32>
    %122 = tpu.reciprocal %121 {approx = true} : vector<5x1xf32> -> vector<5x1xf32>
    %123 = vector.broadcast %122 : vector<5x1xf32> to vector<5x5xf32>
    %124 = arith.mulf %119, %123 : vector<5x5xf32>
    %125 = arith.truncf %124 : vector<5x5xf32> to vector<5x5xbf16>
    %126 = arith.truncf %111 : vector<5x8xf32> to vector<5x8xbf16>
    %cst_85 = arith.constant dense<0.000000e+00> : vector<5x8xf32>
    %127 = tpu.matmul %125, %126, %cst_85 {dimension_numbers = #tpu.dot_dimension_numbers<[1], [0], [0], [1], [0, 0, 1, 1], [], []>} : vector<5x5xbf16>, vector<5x8xbf16>, vector<5x8xf32> -> vector<5x8xf32>
    %c2_86 = arith.constant 2 : index
    %c0_87 = arith.constant 0 : index
    %c0_88 = arith.constant 0 : index
    %128 = vector.load %arg10[%c2_86, %c0_87, %c0_88] : memref<4x8x32xbf16, #tpu.memory_space<vmem>>, vector<1x8x32xbf16>
    %129 = vector.shape_cast %128 : vector<1x8x32xbf16> to vector<8x32xbf16>
    %130 = arith.truncf %127 : vector<5x8xf32> to vector<5x8xbf16>
    %cst_89 = arith.constant dense<0.000000e+00> : vector<5x32xf32>
    %131 = tpu.matmul %130, %129, %cst_89 {dimension_numbers = #tpu.dot_dimension_numbers<[1], [0], [0], [1], [0, 0, 1, 1], [], []>} : vector<5x8xbf16>, vector<8x32xbf16>, vector<5x32xf32> -> vector<5x32xf32>
    %132 = arith.addf %90, %131 : vector<5x32xf32>
    %c3 = arith.constant 3 : index
    %c0_90 = arith.constant 0 : index
    %c0_91 = arith.constant 0 : index
    %133 = vector.load %arg4[%c3, %c0_90, %c0_91] : memref<4x32x8xbf16, #tpu.memory_space<vmem>>, vector<1x32x8xbf16>
    %134 = vector.shape_cast %133 : vector<1x32x8xbf16> to vector<32x8xbf16>
    %cst_92 = arith.constant dense<0.000000e+00> : vector<5x8xf32>
    %135 = tpu.matmul %7, %134, %cst_92 {dimension_numbers = #tpu.dot_dimension_numbers<[1], [0], [0], [1], [0, 0, 1, 1], [], []>} : vector<5x32xbf16>, vector<32x8xbf16>, vector<5x8xf32> -> vector<5x8xf32>
    %c3_93 = arith.constant 3 : index
    %c0_94 = arith.constant 0 : index
    %c0_95 = arith.constant 0 : index
    %136 = vector.load %arg5[%c3_93, %c0_94, %c0_95] : memref<4x1x8xf32, #tpu.memory_space<vmem>>, vector<1x1x8xf32>
    %137 = vector.shape_cast %136 : vector<1x1x8xf32> to vector<1x8xf32>
    %138 = vector.broadcast %137 : vector<1x8xf32> to vector<5x8xf32>
    %139 = arith.addf %135, %138 : vector<5x8xf32>
    %c3_96 = arith.constant 3 : index
    %c0_97 = arith.constant 0 : index
    %c0_98 = arith.constant 0 : index
    %140 = vector.load %arg6[%c3_96, %c0_97, %c0_98] : memref<4x32x8xbf16, #tpu.memory_space<vmem>>, vector<1x32x8xbf16>
    %141 = vector.shape_cast %140 : vector<1x32x8xbf16> to vector<32x8xbf16>
    %cst_99 = arith.constant dense<0.000000e+00> : vector<5x8xf32>
    %142 = tpu.matmul %7, %141, %cst_99 {dimension_numbers = #tpu.dot_dimension_numbers<[1], [0], [0], [1], [0, 0, 1, 1], [], []>} : vector<5x32xbf16>, vector<32x8xbf16>, vector<5x8xf32> -> vector<5x8xf32>
    %c3_100 = arith.constant 3 : index
    %c0_101 = arith.constant 0 : index
    %c0_102 = arith.constant 0 : index
    %143 = vector.load %arg7[%c3_100, %c0_101, %c0_102] : memref<4x1x8xf32, #tpu.memory_space<vmem>>, vector<1x1x8xf32>
    %144 = vector.shape_cast %143 : vector<1x1x8xf32> to vector<1x8xf32>
    %145 = vector.broadcast %144 : vector<1x8xf32> to vector<5x8xf32>
    %146 = arith.addf %142, %145 : vector<5x8xf32>
    %c3_103 = arith.constant 3 : index
    %c0_104 = arith.constant 0 : index
    %c0_105 = arith.constant 0 : index
    %147 = vector.load %arg8[%c3_103, %c0_104, %c0_105] : memref<4x32x8xbf16, #tpu.memory_space<vmem>>, vector<1x32x8xbf16>
    %148 = vector.shape_cast %147 : vector<1x32x8xbf16> to vector<32x8xbf16>
    %cst_106 = arith.constant dense<0.000000e+00> : vector<5x8xf32>
    %149 = tpu.matmul %7, %148, %cst_106 {dimension_numbers = #tpu.dot_dimension_numbers<[1], [0], [0], [1], [0, 0, 1, 1], [], []>} : vector<5x32xbf16>, vector<32x8xbf16>, vector<5x8xf32> -> vector<5x8xf32>
    %c3_107 = arith.constant 3 : index
    %c0_108 = arith.constant 0 : index
    %c0_109 = arith.constant 0 : index
    %150 = vector.load %arg9[%c3_107, %c0_108, %c0_109] : memref<4x1x8xf32, #tpu.memory_space<vmem>>, vector<1x1x8xf32>
    %151 = vector.shape_cast %150 : vector<1x1x8xf32> to vector<1x8xf32>
    %152 = vector.broadcast %151 : vector<1x8xf32> to vector<5x8xf32>
    %153 = arith.addf %149, %152 : vector<5x8xf32>
    %154 = arith.truncf %139 : vector<5x8xf32> to vector<5x8xbf16>
    %155 = arith.truncf %146 : vector<5x8xf32> to vector<5x8xbf16>
    %cst_110 = arith.constant dense<0.000000e+00> : vector<5x5xf32>
    %156 = tpu.matmul %154, %155, %cst_110 {dimension_numbers = #tpu.dot_dimension_numbers<[1], [1], [0], [0], [0, 0, 1, 0], [], []>} : vector<5x8xbf16>, vector<5x8xbf16>, vector<5x5xf32> -> vector<5x5xf32>
    %cst_111 = arith.constant dense<0xFF800000> : vector<5xf32>
    %157 = vector.multi_reduction <maximumf>, %156, %cst_111 [1] : vector<5x5xf32> to vector<5xf32>
    %158 = vector.shape_cast %157 : vector<5xf32> to vector<5x1xf32>
    %159 = vector.broadcast %158 : vector<5x1xf32> to vector<5x5xf32>
    %160 = arith.subf %156, %159 : vector<5x5xf32>
    %161 = math.exp %160 : vector<5x5xf32>
    %cst_112 = arith.constant dense<0.000000e+00> : vector<5xf32>
    %162 = vector.multi_reduction <add>, %161, %cst_112 [1] : vector<5x5xf32> to vector<5xf32>
    %163 = vector.shape_cast %162 : vector<5xf32> to vector<5x1xf32>
    %164 = tpu.reciprocal %163 {approx = true} : vector<5x1xf32> -> vector<5x1xf32>
    %165 = vector.broadcast %164 : vector<5x1xf32> to vector<5x5xf32>
    %166 = arith.mulf %161, %165 : vector<5x5xf32>
    %167 = arith.truncf %166 : vector<5x5xf32> to vector<5x5xbf16>
    %168 = arith.truncf %153 : vector<5x8xf32> to vector<5x8xbf16>
    %cst_113 = arith.constant dense<0.000000e+00> : vector<5x8xf32>
    %169 = tpu.matmul %167, %168, %cst_113 {dimension_numbers = #tpu.dot_dimension_numbers<[1], [0], [0], [1], [0, 0, 1, 1], [], []>} : vector<5x5xbf16>, vector<5x8xbf16>, vector<5x8xf32> -> vector<5x8xf32>
    %c3_114 = arith.constant 3 : index
    %c0_115 = arith.constant 0 : index
    %c0_116 = arith.constant 0 : index
    %170 = vector.load %arg10[%c3_114, %c0_115, %c0_116] : memref<4x8x32xbf16, #tpu.memory_space<vmem>>, vector<1x8x32xbf16>
    %171 = vector.shape_cast %170 : vector<1x8x32xbf16> to vector<8x32xbf16>
    %172 = arith.truncf %169 : vector<5x8xf32> to vector<5x8xbf16>
    %cst_117 = arith.constant dense<0.000000e+00> : vector<5x32xf32>
    %173 = tpu.matmul %172, %171, %cst_117 {dimension_numbers = #tpu.dot_dimension_numbers<[1], [0], [0], [1], [0, 0, 1, 1], [], []>} : vector<5x8xbf16>, vector<8x32xbf16>, vector<5x32xf32> -> vector<5x32xf32>
    %174 = arith.addf %132, %173 : vector<5x32xf32>
    %c0_118 = arith.constant 0 : index
    %c0_119 = arith.constant 0 : index
    %175 = vector.load %arg11[%c0_118, %c0_119] : memref<1x32xf32, #tpu.memory_space<vmem>>, vector<1x32xf32>
    %176 = vector.broadcast %175 : vector<1x32xf32> to vector<5x32xf32>
    %177 = arith.addf %174, %176 : vector<5x32xf32>
    %178 = arith.addf %6, %177 : vector<5x32xf32>
    %c0_120 = arith.constant 0 : index
    %c0_121 = arith.constant 0 : index
    %179 = vector.load %arg12[%c0_120, %c0_121] : memref<1x32xf32, #tpu.memory_space<vmem>>, vector<1x32xf32>
    %c0_122 = arith.constant 0 : index
    %c0_123 = arith.constant 0 : index
    %180 = vector.load %arg13[%c0_122, %c0_123] : memref<1x32xf32, #tpu.memory_space<vmem>>, vector<1x32xf32>
    %cst_124 = arith.constant dense<0.000000e+00> : vector<5xf32>
    %181 = vector.multi_reduction <add>, %178, %cst_124 [1] : vector<5x32xf32> to vector<5xf32>
    %182 = vector.shape_cast %181 : vector<5xf32> to vector<5x1xf32>
    %cst_125 = arith.constant 3.200000e+01 : f32
    %183 = vector.broadcast %cst_125 : f32 to vector<5x1xf32>
    %184 = arith.divf %182, %183 : vector<5x1xf32>
    %185 = vector.broadcast %184 : vector<5x1xf32> to vector<5x32xf32>
    %186 = arith.subf %178, %185 : vector<5x32xf32>
    %187 = arith.mulf %186, %186 : vector<5x32xf32>
    %cst_126 = arith.constant dense<0.000000e+00> : vector<5xf32>
    %188 = vector.multi_reduction <add>, %187, %cst_126 [1] : vector<5x32xf32> to vector<5xf32>
    %189 = vector.shape_cast %188 : vector<5xf32> to vector<5x1xf32>
    %cst_127 = arith.constant 3.200000e+01 : f32
    %190 = vector.broadcast %cst_127 : f32 to vector<5x1xf32>
    %191 = arith.divf %189, %190 : vector<5x1xf32>
    %192 = vector.broadcast %184 : vector<5x1xf32> to vector<5x32xf32>
    %193 = arith.subf %178, %192 : vector<5x32xf32>
    %cst_128 = arith.constant 9.99999974E-6 : f32
    %194 = vector.broadcast %cst_128 : f32 to vector<5x1xf32>
    %195 = arith.addf %191, %194 : vector<5x1xf32>
    %196 = math.rsqrt %195 : vector<5x1xf32>
    %197 = vector.broadcast %196 : vector<5x1xf32> to vector<5x32xf32>
    %198 = arith.mulf %193, %197 : vector<5x32xf32>
    %199 = vector.broadcast %179 : vector<1x32xf32> to vector<5x32xf32>
    %200 = arith.mulf %198, %199 : vector<5x32xf32>
    %201 = vector.broadcast %180 : vector<1x32xf32> to vector<5x32xf32>
    %202 = arith.addf %200, %201 : vector<5x32xf32>
    %c0_129 = arith.constant 0 : index
    %c0_130 = arith.constant 0 : index
    %203 = vector.load %arg16[%c0_129, %c0_130] : memref<32x2048xbf16, #tpu.memory_space<vmem>>, vector<32x2048xbf16>
    %204 = arith.truncf %202 : vector<5x32xf32> to vector<5x32xbf16>
    %cst_131 = arith.constant dense<0.000000e+00> : vector<5x2048xf32>
    %205 = tpu.matmul %204, %203, %cst_131 {dimension_numbers = #tpu.dot_dimension_numbers<[1], [0], [0], [1], [0, 0, 1, 1], [], []>} : vector<5x32xbf16>, vector<32x2048xbf16>, vector<5x2048xf32> -> vector<5x2048xf32>
    %c0_132 = arith.constant 0 : index
    %c0_133 = arith.constant 0 : index
    %206 = vector.load %arg17[%c0_132, %c0_133] : memref<1x2048xf32, #tpu.memory_space<vmem>>, vector<1x2048xf32>
    %207 = vector.broadcast %206 : vector<1x2048xf32> to vector<5x2048xf32>
    %208 = arith.addf %205, %207 : vector<5x2048xf32>
    %cst_134 = arith.constant 0.000000e+00 : f32
    %209 = vector.broadcast %cst_134 : f32 to vector<5x2048xf32>
    %210 = arith.maximumf %208, %209 : vector<5x2048xf32>
    %c0_135 = arith.constant 0 : index
    %c0_136 = arith.constant 0 : index
    %211 = vector.load %arg18[%c0_135, %c0_136] : memref<2048x32xbf16, #tpu.memory_space<vmem>>, vector<2048x32xbf16>
    %212 = arith.truncf %210 : vector<5x2048xf32> to vector<5x2048xbf16>
    %cst_137 = arith.constant dense<0.000000e+00> : vector<5x32xf32>
    %213 = tpu.matmul %212, %211, %cst_137 {dimension_numbers = #tpu.dot_dimension_numbers<[1], [0], [0], [1], [0, 0, 1, 1], [], []>} : vector<5x2048xbf16>, vector<2048x32xbf16>, vector<5x32xf32> -> vector<5x32xf32>
    %c0_138 = arith.constant 0 : index
    %c0_139 = arith.constant 0 : index
    %214 = vector.load %arg19[%c0_138, %c0_139] : memref<1x32xf32, #tpu.memory_space<vmem>>, vector<1x32xf32>
    %215 = vector.broadcast %214 : vector<1x32xf32> to vector<5x32xf32>
    %216 = arith.addf %213, %215 : vector<5x32xf32>
    %217 = arith.addf %202, %216 : vector<5x32xf32>
    %c0_140 = arith.constant 0 : index
    %c0_141 = arith.constant 0 : index
    %218 = vector.load %arg14[%c0_140, %c0_141] : memref<1x32xf32, #tpu.memory_space<vmem>>, vector<1x32xf32>
    %c0_142 = arith.constant 0 : index
    %c0_143 = arith.constant 0 : index
    %219 = vector.load %arg15[%c0_142, %c0_143] : memref<1x32xf32, #tpu.memory_space<vmem>>, vector<1x32xf32>
    %cst_144 = arith.constant dense<0.000000e+00> : vector<5xf32>
    %220 = vector.multi_reduction <add>, %217, %cst_144 [1] : vector<5x32xf32> to vector<5xf32>
    %221 = vector.shape_cast %220 : vector<5xf32> to vector<5x1xf32>
    %cst_145 = arith.constant 3.200000e+01 : f32
    %222 = vector.broadcast %cst_145 : f32 to vector<5x1xf32>
    %223 = arith.divf %221, %222 : vector<5x1xf32>
    %224 = vector.broadcast %223 : vector<5x1xf32> to vector<5x32xf32>
    %225 = arith.subf %217, %224 : vector<5x32xf32>
    %226 = arith.mulf %225, %225 : vector<5x32xf32>
    %cst_146 = arith.constant dense<0.000000e+00> : vector<5xf32>
    %227 = vector.multi_reduction <add>, %226, %cst_146 [1] : vector<5x32xf32> to vector<5xf32>
    %228 = vector.shape_cast %227 : vector<5xf32> to vector<5x1xf32>
    %cst_147 = arith.constant 3.200000e+01 : f32
    %229 = vector.broadcast %cst_147 : f32 to vector<5x1xf32>
    %230 = arith.divf %228, %229 : vector<5x1xf32>
    %231 = vector.broadcast %223 : vector<5x1xf32> to vector<5x32xf32>
    %232 = arith.subf %217, %231 : vector<5x32xf32>
    %cst_148 = arith.constant 9.99999974E-6 : f32
    %233 = vector.broadcast %cst_148 : f32 to vector<5x1xf32>
    %234 = arith.addf %230, %233 : vector<5x1xf32>
    %235 = math.rsqrt %234 : vector<5x1xf32>
    %236 = vector.broadcast %235 : vector<5x1xf32> to vector<5x32xf32>
    %237 = arith.mulf %232, %236 : vector<5x32xf32>
    %238 = vector.broadcast %218 : vector<1x32xf32> to vector<5x32xf32>
    %239 = arith.mulf %237, %238 : vector<5x32xf32>
    %240 = vector.broadcast %219 : vector<1x32xf32> to vector<5x32xf32>
    %241 = arith.addf %239, %240 : vector<5x32xf32>
    %c0_149 = arith.constant 0 : index
    %c0_150 = arith.constant 0 : index
    %242 = vector.load %arg21[%c0_149, %c0_150] : memref<1x32xf32, #tpu.memory_space<vmem>>, vector<1x32xf32>
    %243 = vector.extract_strided_slice %241 {offsets = [0, 0], sizes = [1, 32], strides = [1, 1]} : vector<5x32xf32> to vector<1x32xf32>
    %c0_151 = arith.constant 0 : index
    %c0_152 = arith.constant 0 : index
    %c0_153 = arith.constant 0 : index
    %244 = vector.load %arg20[%c0_151, %c0_152, %c0_153] : memref<5x32x32xbf16, #tpu.memory_space<vmem>>, vector<1x32x32xbf16>
    %245 = vector.shape_cast %244 : vector<1x32x32xbf16> to vector<32x32xbf16>
    %246 = arith.truncf %243 : vector<1x32xf32> to vector<1x32xbf16>
    %cst_154 = arith.constant dense<0.000000e+00> : vector<1x32xf32>
    %247 = tpu.matmul %246, %245, %cst_154 {dimension_numbers = #tpu.dot_dimension_numbers<[1], [0], [0], [1], [0, 0, 1, 1], [], []>} : vector<1x32xbf16>, vector<32x32xbf16>, vector<1x32xf32> -> vector<1x32xf32>
    %248 = arith.addf %242, %247 : vector<1x32xf32>
    %249 = vector.extract_strided_slice %241 {offsets = [1, 0], sizes = [1, 32], strides = [1, 1]} : vector<5x32xf32> to vector<1x32xf32>
    %c1_155 = arith.constant 1 : index
    %c0_156 = arith.constant 0 : index
    %c0_157 = arith.constant 0 : index
    %250 = vector.load %arg20[%c1_155, %c0_156, %c0_157] : memref<5x32x32xbf16, #tpu.memory_space<vmem>>, vector<1x32x32xbf16>
    %251 = vector.shape_cast %250 : vector<1x32x32xbf16> to vector<32x32xbf16>
    %252 = arith.truncf %249 : vector<1x32xf32> to vector<1x32xbf16>
    %cst_158 = arith.constant dense<0.000000e+00> : vector<1x32xf32>
    %253 = tpu.matmul %252, %251, %cst_158 {dimension_numbers = #tpu.dot_dimension_numbers<[1], [0], [0], [1], [0, 0, 1, 1], [], []>} : vector<1x32xbf16>, vector<32x32xbf16>, vector<1x32xf32> -> vector<1x32xf32>
    %254 = arith.addf %248, %253 : vector<1x32xf32>
    %255 = vector.extract_strided_slice %241 {offsets = [2, 0], sizes = [1, 32], strides = [1, 1]} : vector<5x32xf32> to vector<1x32xf32>
    %c2_159 = arith.constant 2 : index
    %c0_160 = arith.constant 0 : index
    %c0_161 = arith.constant 0 : index
    %256 = vector.load %arg20[%c2_159, %c0_160, %c0_161] : memref<5x32x32xbf16, #tpu.memory_space<vmem>>, vector<1x32x32xbf16>
    %257 = vector.shape_cast %256 : vector<1x32x32xbf16> to vector<32x32xbf16>
    %258 = arith.truncf %255 : vector<1x32xf32> to vector<1x32xbf16>
    %cst_162 = arith.constant dense<0.000000e+00> : vector<1x32xf32>
    %259 = tpu.matmul %258, %257, %cst_162 {dimension_numbers = #tpu.dot_dimension_numbers<[1], [0], [0], [1], [0, 0, 1, 1], [], []>} : vector<1x32xbf16>, vector<32x32xbf16>, vector<1x32xf32> -> vector<1x32xf32>
    %260 = arith.addf %254, %259 : vector<1x32xf32>
    %261 = vector.extract_strided_slice %241 {offsets = [3, 0], sizes = [1, 32], strides = [1, 1]} : vector<5x32xf32> to vector<1x32xf32>
    %c3_163 = arith.constant 3 : index
    %c0_164 = arith.constant 0 : index
    %c0_165 = arith.constant 0 : index
    %262 = vector.load %arg20[%c3_163, %c0_164, %c0_165] : memref<5x32x32xbf16, #tpu.memory_space<vmem>>, vector<1x32x32xbf16>
    %263 = vector.shape_cast %262 : vector<1x32x32xbf16> to vector<32x32xbf16>
    %264 = arith.truncf %261 : vector<1x32xf32> to vector<1x32xbf16>
    %cst_166 = arith.constant dense<0.000000e+00> : vector<1x32xf32>
    %265 = tpu.matmul %264, %263, %cst_166 {dimension_numbers = #tpu.dot_dimension_numbers<[1], [0], [0], [1], [0, 0, 1, 1], [], []>} : vector<1x32xbf16>, vector<32x32xbf16>, vector<1x32xf32> -> vector<1x32xf32>
    %266 = arith.addf %260, %265 : vector<1x32xf32>
    %267 = vector.extract_strided_slice %241 {offsets = [4, 0], sizes = [1, 32], strides = [1, 1]} : vector<5x32xf32> to vector<1x32xf32>
    %c4 = arith.constant 4 : index
    %c0_167 = arith.constant 0 : index
    %c0_168 = arith.constant 0 : index
    %268 = vector.load %arg20[%c4, %c0_167, %c0_168] : memref<5x32x32xbf16, #tpu.memory_space<vmem>>, vector<1x32x32xbf16>
    %269 = vector.shape_cast %268 : vector<1x32x32xbf16> to vector<32x32xbf16>
    %270 = arith.truncf %267 : vector<1x32xf32> to vector<1x32xbf16>
    %cst_169 = arith.constant dense<0.000000e+00> : vector<1x32xf32>
    %271 = tpu.matmul %270, %269, %cst_169 {dimension_numbers = #tpu.dot_dimension_numbers<[1], [0], [0], [1], [0, 0, 1, 1], [], []>} : vector<1x32xbf16>, vector<32x32xbf16>, vector<1x32xf32> -> vector<1x32xf32>
    %272 = arith.addf %266, %271 : vector<1x32xf32>
    %cst_170 = arith.constant 0.000000e+00 : f32
    %273 = vector.broadcast %cst_170 : f32 to vector<1x32xf32>
    %274 = arith.subf %273, %272 : vector<1x32xf32>
    %275 = math.exp %274 : vector<1x32xf32>
    %cst_171 = arith.constant 1.000000e+00 : f32
    %276 = vector.broadcast %cst_171 : f32 to vector<1x32xf32>
    %277 = arith.addf %276, %275 : vector<1x32xf32>
    %278 = tpu.reciprocal %277 {approx = true} : vector<1x32xf32> -> vector<1x32xf32>
    %279 = arith.mulf %272, %278 : vector<1x32xf32>
    %c0_172 = arith.constant 0 : index
    %c0_173 = arith.constant 0 : index
    %280 = vector.load %arg22[%c0_172, %c0_173] : memref<32x16xbf16, #tpu.memory_space<vmem>>, vector<32x16xbf16>
    %281 = arith.truncf %279 : vector<1x32xf32> to vector<1x32xbf16>
    %cst_174 = arith.constant dense<0.000000e+00> : vector<1x16xf32>
    %282 = tpu.matmul %281, %280, %cst_174 {dimension_numbers = #tpu.dot_dimension_numbers<[1], [0], [0], [1], [0, 0, 1, 1], [], []>} : vector<1x32xbf16>, vector<32x16xbf16>, vector<1x16xf32> -> vector<1x16xf32>
    %c0_175 = arith.constant 0 : index
    %c0_176 = arith.constant 0 : index
    %283 = vector.load %arg23[%c0_175, %c0_176] : memref<1x16xf32, #tpu.memory_space<vmem>>, vector<1x16xf32>
    %284 = arith.addf %282, %283 : vector<1x16xf32>
    %cst_177 = arith.constant 0.000000e+00 : f32
    %285 = vector.broadcast %cst_177 : f32 to vector<1x16xf32>
    %286 = arith.subf %285, %284 : vector<1x16xf32>
    %287 = math.exp %286 : vector<1x16xf32>
    %cst_178 = arith.constant 1.000000e+00 : f32
    %288 = vector.broadcast %cst_178 : f32 to vector<1x16xf32>
    %289 = arith.addf %288, %287 : vector<1x16xf32>
    %290 = tpu.reciprocal %289 {approx = true} : vector<1x16xf32> -> vector<1x16xf32>
    %291 = arith.mulf %284, %290 : vector<1x16xf32>
    %c0_179 = arith.constant 0 : index
    %c0_180 = arith.constant 0 : index
    %292 = vector.load %arg24[%c0_179, %c0_180] : memref<16x8xbf16, #tpu.memory_space<vmem>>, vector<16x8xbf16>
    %293 = arith.truncf %291 : vector<1x16xf32> to vector<1x16xbf16>
    %cst_181 = arith.constant dense<0.000000e+00> : vector<1x8xf32>
    %294 = tpu.matmul %293, %292, %cst_181 {dimension_numbers = #tpu.dot_dimension_numbers<[1], [0], [0], [1], [0, 0, 1, 1], [], []>} : vector<1x16xbf16>, vector<16x8xbf16>, vector<1x8xf32> -> vector<1x8xf32>
    %c0_182 = arith.constant 0 : index
    %c0_183 = arith.constant 0 : index
    %295 = vector.load %arg25[%c0_182, %c0_183] : memref<1x8xf32, #tpu.memory_space<vmem>>, vector<1x8xf32>
    %296 = arith.addf %294, %295 : vector<1x8xf32>
    %c0_184 = arith.constant 0 : index
    %c0_185 = arith.constant 0 : index
    %297 = vector.load %arg26[%c0_184, %c0_185] : memref<1x8xf32, #tpu.memory_space<vmem>>, vector<1x8xf32>
    tpu.vector_store %arg26[%c0_184, %c0_185], %296 {strides = array<i32>} : memref<1x8xf32, #tpu.memory_space<vmem>>, vector<1x8xf32>,
    return
  }
  func.func @transform_0(%arg0: i32) -> (i32, i32) {
    %c0_i32 = arith.constant 0 : i32
    %c0_i32_0 = arith.constant 0 : i32
    %c0_i32_1 = arith.constant 0 : i32
    return %c0_i32, %c0_i32_0 : i32, i32
  }
  func.func @transform_1(%arg0: i32) -> (i32, i32) {
    %c0_i32 = arith.constant 0 : i32
    %c0_i32_0 = arith.constant 0 : i32
    %c0_i32_1 = arith.constant 0 : i32
    return %c0_i32, %c0_i32_0 : i32, i32
  }
  func.func @transform_2(%arg0: i32) -> (i32, i32) {
    %c0_i32 = arith.constant 0 : i32
    %c0_i32_0 = arith.constant 0 : i32
    %c0_i32_1 = arith.constant 0 : i32
    return %c0_i32, %c0_i32_0 : i32, i32
  }
  func.func @transform_3(%arg0: i32) -> (i32, i32, i32) {
    %c0_i32 = arith.constant 0 : i32
    %c0_i32_0 = arith.constant 0 : i32
    %c0_i32_1 = arith.constant 0 : i32
    %c0_i32_2 = arith.constant 0 : i32
    return %c0_i32, %c0_i32_0, %c0_i32_1 : i32, i32, i32
  }
  func.func @transform_4(%arg0: i32) -> (i32, i32, i32) {
    %c0_i32 = arith.constant 0 : i32
    %c0_i32_0 = arith.constant 0 : i32
    %c0_i32_1 = arith.constant 0 : i32
    %c0_i32_2 = arith.constant 0 : i32
    return %c0_i32, %c0_i32_0, %c0_i32_1 : i32, i32, i32
  }
  func.func @transform_5(%arg0: i32) -> (i32, i32, i32) {
    %c0_i32 = arith.constant 0 : i32
    %c0_i32_0 = arith.constant 0 : i32
    %c0_i32_1 = arith.constant 0 : i32
    %c0_i32_2 = arith.constant 0 : i32
    return %c0_i32, %c0_i32_0, %c0_i32_1 : i32, i32, i32
  }
  func.func @transform_6(%arg0: i32) -> (i32, i32, i32) {
    %c0_i32 = arith.constant 0 : i32
    %c0_i32_0 = arith.constant 0 : i32
    %c0_i32_1 = arith.constant 0 : i32
    %c0_i32_2 = arith.constant 0 : i32
    return %c0_i32, %c0_i32_0, %c0_i32_1 : i32, i32, i32
  }
  func.func @transform_7(%arg0: i32) -> (i32, i32, i32) {
    %c0_i32 = arith.constant 0 : i32
    %c0_i32_0 = arith.constant 0 : i32
    %c0_i32_1 = arith.constant 0 : i32
    %c0_i32_2 = arith.constant 0 : i32
    return %c0_i32, %c0_i32_0, %c0_i32_1 : i32, i32, i32
  }
  func.func @transform_8(%arg0: i32) -> (i32, i32, i32) {
    %c0_i32 = arith.constant 0 : i32
    %c0_i32_0 = arith.constant 0 : i32
    %c0_i32_1 = arith.constant 0 : i32
    %c0_i32_2 = arith.constant 0 : i32
    return %c0_i32, %c0_i32_0, %c0_i32_1 : i32, i32, i32
  }
  func.func @transform_9(%arg0: i32) -> (i32, i32, i32) {
    %c0_i32 = arith.constant 0 : i32
    %c0_i32_0 = arith.constant 0 : i32
    %c0_i32_1 = arith.constant 0 : i32
    %c0_i32_2 = arith.constant 0 : i32
    return %c0_i32, %c0_i32_0, %c0_i32_1 : i32, i32, i32
  }
  func.func @transform_10(%arg0: i32) -> (i32, i32) {
    %c0_i32 = arith.constant 0 : i32
    %c0_i32_0 = arith.constant 0 : i32
    %c0_i32_1 = arith.constant 0 : i32
    return %c0_i32, %c0_i32_0 : i32, i32
  }
  func.func @transform_11(%arg0: i32) -> (i32, i32) {
    %c0_i32 = arith.constant 0 : i32
    %c0_i32_0 = arith.constant 0 : i32
    %c0_i32_1 = arith.constant 0 : i32
    return %c0_i32, %c0_i32_0 : i32, i32
  }
  func.func @transform_12(%arg0: i32) -> (i32, i32) {
    %c0_i32 = arith.constant 0 : i32
    %c0_i32_0 = arith.constant 0 : i32
    %c0_i32_1 = arith.constant 0 : i32
    return %c0_i32, %c0_i32_0 : i32, i32
  }
  func.func @transform_13(%arg0: i32) -> (i32, i32) {
    %c0_i32 = arith.constant 0 : i32
    %c0_i32_0 = arith.constant 0 : i32
    %c0_i32_1 = arith.constant 0 : i32
    return %c0_i32, %c0_i32_0 : i32, i32
  }
  func.func @transform_14(%arg0: i32) -> (i32, i32) {
    %c0_i32 = arith.constant 0 : i32
    %c0_i32_0 = arith.constant 0 : i32
    %c0_i32_1 = arith.constant 0 : i32
    return %c0_i32, %c0_i32_0 : i32, i32
  }
  func.func @transform_15(%arg0: i32) -> (i32, i32) {
    %c0_i32 = arith.constant 0 : i32
    %c0_i32_0 = arith.constant 0 : i32
    %c0_i32_1 = arith.constant 0 : i32
    return %c0_i32, %c0_i32_0 : i32, i32
  }
  func.func @transform_16(%arg0: i32) -> (i32, i32) {
    %c0_i32 = arith.constant 0 : i32
    %c0_i32_0 = arith.constant 0 : i32
    %c0_i32_1 = arith.constant 0 : i32
    return %c0_i32, %c0_i32_0 : i32, i32
  }
  func.func @transform_17(%arg0: i32) -> (i32, i32) {
    %c0_i32 = arith.constant 0 : i32
    %c0_i32_0 = arith.constant 0 : i32
    %c0_i32_1 = arith.constant 0 : i32
    return %c0_i32, %c0_i32_0 : i32, i32
  }
  func.func @transform_18(%arg0: i32) -> (i32, i32) {
    %c0_i32 = arith.constant 0 : i32
    %c0_i32_0 = arith.constant 0 : i32
    %c0_i32_1 = arith.constant 0 : i32
    return %c0_i32, %c0_i32_0 : i32, i32
  }
  func.func @transform_19(%arg0: i32) -> (i32, i32, i32) {
    %c0_i32 = arith.constant 0 : i32
    %c0_i32_0 = arith.constant 0 : i32
    %c0_i32_1 = arith.constant 0 : i32
    %c0_i32_2 = arith.constant 0 : i32
    return %c0_i32, %c0_i32_0, %c0_i32_1 : i32, i32, i32
  }
  func.func @transform_20(%arg0: i32) -> (i32, i32) {
    %c0_i32 = arith.constant 0 : i32
    %c0_i32_0 = arith.constant 0 : i32
    %c0_i32_1 = arith.constant 0 : i32
    return %c0_i32, %c0_i32_0 : i32, i32
  }
  func.func @transform_21(%arg0: i32) -> (i32, i32) {
    %c0_i32 = arith.constant 0 : i32
    %c0_i32_0 = arith.constant 0 : i32
    %c0_i32_1 = arith.constant 0 : i32
    return %c0_i32, %c0_i32_0 : i32, i32
  }
  func.func @transform_22(%arg0: i32) -> (i32, i32) {
    %c0_i32 = arith.constant 0 : i32
    %c0_i32_0 = arith.constant 0 : i32
    %c0_i32_1 = arith.constant 0 : i32
    return %c0_i32, %c0_i32_0 : i32, i32
  }
  func.func @transform_23(%arg0: i32) -> (i32, i32) {
    %c0_i32 = arith.constant 0 : i32
    %c0_i32_0 = arith.constant 0 : i32
    %c0_i32_1 = arith.constant 0 : i32
    return %c0_i32, %c0_i32_0 : i32, i32
  }
  func.func @transform_24(%arg0: i32) -> (i32, i32) {
    %c0_i32 = arith.constant 0 : i32
    %c0_i32_0 = arith.constant 0 : i32
    %c0_i32_1 = arith.constant 0 : i32
    return %c0_i32, %c0_i32_0 : i32, i32
  }
  func.func @transform_25(%arg0: i32) -> (i32, i32) {
    %c0_i32 = arith.constant 0 : i32
    %c0_i32_0 = arith.constant 0 : i32
    %c0_i32_1 = arith.constant 0 : i32
    return %c0_i32, %c0_i32_0 : i32, i32
  }
}

</mosaic_0001>

<bundles_post_ra>
// kernel: tpu_custom_call.1
= control target key start
LH: loop header
LB: loop body
LE: loop exit
PB: predicated region body
PF: predicated region fallthrough
CT: control target
= control target key end

     0   :  { %s6224_s0 = inlined_call_operand.vmem [shape: f32[5,8], index: 0, kind: input, shape index: {}]   ;;  %s6225_s1 = inlined_call_operand.vmem [shape: bf16[8,32], index: 1, kind: input, shape index: {}]   ;;  %s6226_s2 = inlined_call_operand.vmem [shape: f32[1,32], index: 2, kind: input, shape index: {}]   ;;  %s6227_s3 = inlined_call_operand.vmem [shape: bf16[4,32,8], index: 3, kind: input, shape index: {}]   ;;  %s6228_s4 = inlined_call_operand.vmem [shape: f32[4,1,8], index: 4, kind: input, shape index: {}]   ;;  %s6229_s5 = inlined_call_operand.vmem [shape: bf16[4,32,8], index: 5, kind: input, shape index: {}]   ;;  %s6230_s6 = inlined_call_operand.vmem [shape: f32[4,1,8], index: 6, kind: input, shape index: {}]   ;;  %s6231_s7 = inlined_call_operand.vmem [shape: bf16[4,32,8], index: 7, kind: input, shape index: {}]   ;;  %s6232_s8 = inlined_call_operand.vmem [shape: f32[4,1,8], index: 8, kind: input, shape index: {}]   ;;  %s6233_s9 = inlined_call_operand.vmem [shape: bf16[4,8,32], index: 9, kind: input, shape index: {}]   ;;  %s6234_s10 = inlined_call_operand.vmem [shape: f32[1,32], index: 10, kind: input, shape index: {}]   ;;  %s6235_s11 = inlined_call_operand.vmem [shape: f32[1,32], index: 11, kind: input, shape index: {}]   ;;  %s6236_s12 = inlined_call_operand.vmem [shape: f32[1,32], index: 12, kind: input, shape index: {}]   ;;  %s6237_s13 = inlined_call_operand.vmem [shape: f32[1,32], index: 13, kind: input, shape index: {}]   ;;  %s6238_s14 = inlined_call_operand.vmem [shape: f32[1,32], index: 14, kind: input, shape index: {}]   ;;  %s6239_s15 = inlined_call_operand.vmem [shape: bf16[32,2048], index: 15, kind: input, shape index: {}]   ;;  %s6240_s16 = inlined_call_operand.vmem [shape: f32[1,2048], index: 16, kind: input, shape index: {}]   ;;  %s6241_s17 = inlined_call_operand.vmem [shape: bf16[2048,32], index: 17, kind: input, shape index: {}]   ;;  %s6242_s18 = inlined_call_operand.vmem [shape: f32[1,32], index: 18, kind: input, shape index: {}]   ;;  %s6243_s19 = inlined_call_operand.vmem [shape: bf16[5,32,32], index: 19, kind: input, shape index: {}]   ;;  %s6244_s20 = inlined_call_operand.vmem [shape: f32[1,32], index: 20, kind: input, shape index: {}]   ;;  %s6245_s21 = inlined_call_operand.vmem [shape: bf16[32,16], index: 21, kind: input, shape index: {}]   ;;  %s6246_s22 = inlined_call_operand.vmem [shape: f32[1,16], index: 22, kind: input, shape index: {}]   ;;  %s6247_s23 = inlined_call_operand.vmem [shape: bf16[16,8], index: 23, kind: input, shape index: {}]   ;;  %s6248_s24 = inlined_call_operand.vmem [shape: f32[1,8], index: 24, kind: input, shape index: {}]   ;;  %s6249_s25 = inlined_call_operand.hbm [shape: f32[1,8], index: 25, kind: output, shape index: {}]  }
   0x1   :  { %6257 = sst [smem:[#allocation5_spill]] %s6224_s0 }
   0x2   :  { %6258 = sst [smem:[#allocation6_spill]] %s6225_s1 }
   0x3   :  { %6259 = sst [smem:[#allocation7_spill]] %s6226_s2 }
   0x4   :  { %6260 = sst [smem:[#allocation8_spill]] %s6227_s3 }
   0x5   :  { %6261 = sst [smem:[#allocation9_spill]] %s6228_s4 }
   0x6   :  { %6262 = sst [smem:[#allocation10_spill]] %s6229_s5 }
   0x7   :  { %6263 = sst [smem:[#allocation11_spill]] %s6230_s6 }
   0x8   :  { %6264 = sst [smem:[#allocation12_spill]] %s6231_s7 }
   0x9   :  { %6265 = sst [smem:[#allocation13_spill]] %s6232_s8 }
   0xa   :  { %6266 = sst [smem:[#allocation14_spill]] %s6233_s9 }
   0xb   :  { %s6267_s6 = sld [smem:[#allocation6_spill]]  ;;  %vm96_vm0 = vcmask 1043456   ;;  %vm92_vm1 = vcmask 64512   ;;  %v5092_v1 = vmov 0.0   ;;  %vm5093_vm2 = vmmov 0  }
   0xc   :  { %4644 = vmatprep.subr.bf16.mxu0 %v5092_v1  ;;  %4646 = vmatprep.mubr.msk.bf16.mxu0 %vm5093_vm2, %v5092_v1  ;;  %s6268_s3 = sld [smem:[#allocation5_spill]] }
   0xd   :  { %s6269_s8 = sld [smem:[#allocation8_spill]]  ;;  %4650 = vmatprep.subr.bf16.mxu1 %v5092_v1  ;;  %4654 = vmatprep.mubr.msk.bf16.mxu1 %vm5093_vm2, %v5092_v1 }
   0xe   :  { %s6270_s28 = sld [smem:[#allocation10_spill]] }
  0x11   :  { %v83_v0 = vld [vmem:[%s6267_s6] sm:$0xf] }
  0x12   :  { %v98_v2 = vsel %vm96_vm0, %v83_v0, 0  ;;  %v82_v3 = vld [vmem:[%s6268_s3] sm:$0x1f] }
  0x13   :  { %v4877_v4 = vld [vmem:[%s6269_s8 + $0x8] sm:$0xff]   ;;  %4645 = vmatpush3.bf16.msra.mxu0 %v98_v2  ;;  %v84_v5 = vpack.c.bf16 %v82_v3, %v82_v3  ;;  %v4879_v7 = vld [vmem:[%s6269_s8] sm:$0xff]  }
  0x14   :  { %4658 = vmatprep.subr.bf16.mxu0 %v5092_v1  ;;  %4651 = vmatpush3.bf16.msra.mxu1 %v4877_v4  ;;  %v4878_v6 = vld [vmem:[%s6270_s28 + $0x8] sm:$0xff]   ;;  %v4880_v8 = vld [vmem:[%s6270_s28] sm:$0xff]  }
  0x15   :  { %4652 = vmatprep.subr.bf16.mxu1 %v5092_v1 }
  0x16   :  { %4647 = vmatmul.mubr.msk.bf16.vlgmr.msra.gmra.mxu0 %vm92_vm1, %v84_v5 }
  0x17   :  { %4659 = vmatpush3.bf16.msra.mxu0 %v4878_v6  ;;  %4662 = vmatprep.mubr.msk.bf16.mxu0 %vm5093_vm2, %v5092_v1 }
  0x18   :  { %4660 = vmatprep.subr.bf16.mxu0 %v5092_v1  ;;  %4653 = vmatpush3.bf16.msra.mxu1 %v4879_v7 }
  0x19   :  { %4666 = vmatprep.subr.bf16.mxu1 %v5092_v1 }
  0x1b   :  { %4661 = vmatpush3.bf16.msra.mxu0 %v4880_v8 }
  0x1c   :  { %4674 = vmatprep.subr.bf16.mxu0 %v5092_v1 }
  0x1d   :  { %30 = vsyncpa [#allocation3], 0  ;;  %s6271_s30 = sld [smem:[#allocation7_spill]]  ;;  %vm164_vm3 = vcmask 261120   ;;  %vm400_vm4 = vcmask 1041408   ;;  %vm401_vm5 = vcmask 1042432  }
  0x1e   :  { %s6272_s26 = sld [smem:[#allocation12_spill]]  ;;  %v5094_v33 = vmov 65535   ;;  %v4883_v39 = vld [vmem:[%s6269_s8 + $0x18] sm:$0xff]   ;;  %v4884_v45 = vld [vmem:[%s6269_s8 + $0x10] sm:$0xff]   ;;  %vm382_vm6 = vcmask 36864   ;;  %vm396_vm7 = vcmask 39936  }
  0x1f   :  { %s6273_s5 = sld [smem:[#allocation11_spill]]  ;;  %v402_v34 = vsel %vm400_vm4, 4294967295, %v5094_v33  ;;  %vm1561_vm8 = vcmask 258048   ;;  %vm4006_vm9 = vcmask 130048   ;;  %vm4050_vm10 = vcmask 57344  }
  0x20   :  { %s6274_s2 = sld [smem:[#allocation9_spill]]  ;;  %v5300_v37 = vsel %vm401_vm5, %v402_v34, 0 }
  0x21   :  { %s6275_s7 = sld [smem:[#allocation13_spill]] }
  0x22   :  { %s6276_s27 = sld [smem:[#allocation14_spill]] }
  0x23   :  { %v4066_v9 = vld [vmem:[%s6271_s30] ss:$0 sm:$0xff] }
  0x24   :  { %v4881_v13 = vld [vmem:[%s6272_s26 + $0x8] sm:$0xff]   ;;  %v4882_v17 = vld [vmem:[%s6272_s26] sm:$0xff]   ;;  %v4885_v46 = vld [vmem:[%s6272_s26 + $0x18] sm:$0xff]  }
  0x25   :  { %v4072_v18 = vld [vmem:[%s6273_s5] ss:$0 sm:$0xff]  ;;  %v4886_v47 = vld [vmem:[%s6272_s26 + $0x10] sm:$0xff]  }
  0x26   :  { %v4068_v25 = vld [vmem:[%s6274_s2] ss:$0 sm:$0xff] }
  0x27   :  { %v4076_v31 = vld [vmem:[%s6275_s7] ss:$0 sm:$0xff]  ;;  %v4105_v57 = vld [vmem:[%s6275_s7 + $0x1] ss:$0 sm:$0xff] }
  0xd6   :  { %v134_v10 = vpop.f32.mrf.mxu0 }
  0xd7   :  { %v5263_v11 = vadd.f32 %v4066_v9, %v134_v10  ;;  %v4887_v10 = vld [vmem:[%s6270_s28 + $0x18] sm:$0xff]  }
  0xd8   :  { %v4648_v12 = vpop.f32.mrf.mxu0 }
  0xd9   :  { %v5270_v14 = vpack.c.bf16 %v5263_v11, %v5263_v11 }
  0xda   :  { %v137_v15 = vpop.f32.mrf.mxu0 }
  0xdb   :  { %4655 = vmatmul.mubr.msk.bf16.vlgmr.msra.gmra.mxu1 %vm164_vm3, %v5270_v14  ;;  %4663 = vmatmul.mubr.msk.bf16.vlgmr.msra.gmra.mxu0 %vm164_vm3, %v5270_v14 }
  0xdc   :  { %v4649_v16 = vpop.f32.mrf.mxu0  ;;  %4667 = vmatpush3.bf16.msra.mxu1 %v4881_v13  ;;  %4670 = vmatprep.mubr.msk.bf16.mxu1 %vm5093_vm2, %v5092_v1  ;;  %v4888_v13 = vld [vmem:[%s6270_s28 + $0x10] sm:$0xff]  }
  0xdd   :  { %4668 = vmatprep.subr.bf16.mxu1 %v5092_v1  ;;  %4676 = vmatprep.mubr.msk.bf16.mxu0 %vm5093_vm2, %v5092_v1 }
  0xe0   :  { %4669 = vmatpush3.bf16.msra.mxu1 %v4882_v17 }
  0xe1   :  { %4680 = vmatprep.subr.bf16.mxu1 %v5092_v1 }
  0xe3   :  { %4671 = vmatmul.mubr.msk.bf16.vlgmr.msra.gmra.mxu1 %vm164_vm3, %v5270_v14 }
  0xe4   :  { %4682 = vmatprep.mubr.msk.bf16.mxu1 %vm5093_vm2, %v5092_v1 }
 0x19b   :  { %v202_v19 = vpop.f32.mrf.mxu1  ;;  %v265_v20 = vpop.f32.mrf.mxu0 }
 0x19c   :  { %v266_v21 = vadd.f32 %v4072_v18, %v265_v20  ;;  %v203_v32 = vadd.f32 %v4068_v25, %v202_v19  ;;  %v4096_v19 = vld [vmem:[%s6273_s5 + $0x1] ss:$0 sm:$0xff] }
 0x19d   :  { %v4656_v22 = vpop.f32.mrf.mxu1  ;;  %v4664_v23 = vpop.f32.mrf.mxu0 }
 0x19e   :  { %v335_v24 = vpack.c.bf16 %v266_v21, %v266_v21  ;;  %v334_v40 = vpack.c.bf16 %v203_v32, %v203_v32 }
 0x19f   :  { %v205_v26 = vpop.f32.mrf.mxu1  ;;  %v268_v27 = vpop.f32.mrf.mxu0 }
 0x1a0   :  { %v340_v28 = vsel %vm92_vm1, %v335_v24, 0  ;;  %v4087_v24 = vld [vmem:[%s6274_s2 + $0x1] ss:$0 sm:$0xff] }
 0x1a1   :  { %v4657_v29 = vpop.f32.mrf.mxu1  ;;  %v4665_v30 = vpop.f32.mrf.mxu0  ;;  %4675 = vmatpush3.bf16.xpose.msra.mxu0 %v340_v28 }
 0x1a2   :  { %4686 = vmatprep.subr.bf16.mxu0 %v5092_v1 }
 0x1a3   :  { %v328_v35 = vpop.f32.mrf.mxu1 }
 0x1a4   :  { %v329_v36 = vadd.f32 %v4076_v31, %v328_v35 }
 0x1a5   :  { %v4672_v38 = vpop.f32.mrf.mxu1 }
 0x1a6   :  { %v395_v41 = vpack.c.bf16 %v329_v36, %v329_v36 }
 0x1a7   :  { %v331_v42 = vpop.f32.mrf.mxu1 }
 0x1a8   :  { %v405_v43 = vand.u32 %v5300_v37, %v395_v41  ;;  %4677 = vmatmul.mubr.msk.bf16.vlgmr.msra.gmra.mxu0 %vm92_vm1, %v334_v40  ;;  %v4111_v41 = vld [vmem:[%s6276_s27 + $0x4] sm:$0xf] }
 0x1a9   :  { %v4673_v44 = vpop.f32.mrf.mxu1  ;;  %4687 = vmatpush3.bf16.msra.mxu0 %v4883_v39  ;;  %4690 = vmatprep.mubr.msk.bf16.mxu0 %vm5093_vm2, %v5092_v1  ;;  %v758_v42 = vsel %vm96_vm0, %v4111_v41, 0 }
 0x1aa   :  { %4681 = vmatpush3.bf16.msra.mxu1 %v405_v43  ;;  %4688 = vmatprep.subr.bf16.mxu0 %v5092_v1 }
 0x1ab   :  { %4694 = vmatprep.subr.bf16.mxu1 %v5092_v1 }
 0x1ad   :  { %4689 = vmatpush3.bf16.msra.mxu0 %v4884_v45  ;;  %v447_v45 = vld [vmem:[%s6276_s27] sm:$0xf] }
 0x1ae   :  { %4702 = vmatprep.subr.bf16.mxu0 %v5092_v1 }
 0x1b0   :  { %4691 = vmatmul.mubr.msk.bf16.vlgmr.msra.gmra.mxu0 %vm164_vm3, %v5270_v14 }
 0x1b1   :  { %4703 = vmatpush3.bf16.msra.mxu0 %v4885_v46  ;;  %4706 = vmatprep.mubr.msk.bf16.mxu0 %vm5093_vm2, %v5092_v1 }
 0x1b2   :  { %4704 = vmatprep.subr.bf16.mxu0 %v5092_v1 }
 0x1b5   :  { %4705 = vmatpush3.bf16.msra.mxu0 %v4886_v47 }
 0x1b6   :  { %4716 = vmatprep.subr.bf16.mxu0 %v5092_v1 }
 0x1b8   :  { %4707 = vmatmul.mubr.msk.bf16.vlgmr.msra.gmra.mxu0 %vm164_vm3, %v5270_v14 }
 0x1b9   :  { %4718 = vmatprep.mubr.msk.bf16.mxu0 %vm5093_vm2, %v5092_v1 }
 0x268   :  { %v376_v48 = vpop.f32.mrf.mxu0 }
 0x269   :  { %v383_v49 = vsel %vm382_vm6, %v376_v48, -inf }
 0x26a   :  { %384 = vmax.xlane.f32.xlu0 %v383_v49  ;;  %v4678_v50 = vpop.f32.mrf.mxu0  ;;  %v4889_v49 = vld [vmem:[%s6270_s28 + $0x28] sm:$0xff]  }
 0x26c   :  { %v379_v51 = vpop.f32.mrf.mxu0 }
 0x26d   :  { %v4890_v51 = vld [vmem:[%s6270_s28 + $0x20] sm:$0xff]  }
 0x26e   :  { %v4679_v52 = vpop.f32.mrf.mxu0 }
 0x270   :  { %v508_v53 = vpop.f32.mrf.mxu0 }
 0x271   :  { %v509_v28 = vadd.f32 %v4087_v24, %v508_v53  ;;  %v4891_v53 = vld [vmem:[%s6269_s8 + $0x28] sm:$0xff]  }
 0x272   :  { %v4692_v54 = vpop.f32.mrf.mxu0 }
 0x273   :  { %v644_v29 = vpack.c.bf16 %v509_v28, %v509_v28 }
 0x274   :  { %v511_v55 = vpop.f32.mrf.mxu0 }
 0x276   :  { %v4693_v56 = vpop.f32.mrf.mxu0 }
 0x278   :  { %v638_v58 = vpop.f32.mrf.mxu0 }
 0x279   :  { %v639_v59 = vadd.f32 %v4105_v57, %v638_v58  ;;  %v4892_v57 = vld [vmem:[%s6269_s8 + $0x20] sm:$0xff]  }
 0x27a   :  { %v4708_v60 = vpop.f32.mrf.mxu0 }
 0x27b   :  { %v704_v61 = vpack.c.bf16 %v639_v59, %v639_v59  ;;  %v4893_v60 = vld [vmem:[%s6272_s26 + $0x28] sm:$0xff]  }
 0x27c   :  { %v641_v62 = vpop.f32.mrf.mxu0 }
 0x27d   :  { %v709_v63 = vand.u32 %v704_v61, %v5300_v37 }
 0x27e   :  { %v4709_v0 = vpop.f32.mrf.mxu0 }
 0x27f   :  { %4717 = vmatpush3.bf16.msra.mxu0 %v709_v63  ;;  %v4894_v63 = vld [vmem:[%s6272_s26 + $0x20] sm:$0xff]  }
 0x280   :  { %4728 = vmatprep.subr.bf16.mxu0 %v5092_v1 }
 0x2f3   :  { %v385_v2 = vpop.xlane.xlu0 %384 }
 0x2f4   :  { %v386_v3 = vsub.f32 %v376_v48, %v385_v2  ;;  %v804_v48 = vsel %vm96_vm0, %v447_v45, 0  ;;  %v4128_v2 = vld [vmem:[%s6273_s5 + $0x2] ss:$0 sm:$0xff] }
 0x2f6   :  { %v387_v4 = vmul.f32 1.442695, %v386_v3 }
 0x2f8   :  { %5042 = vpow2.f32 %v387_v4 }
 0x305   :  { %v5043_v5 = vpop.eup %5042 }
 0x306   :  { %v389_v6 = vsel %vm382_vm6, %v5043_v5, 0.0 }
 0x307   :  { %390 = vadd.xlane.f32.xlu0 %v389_v6 }
 0x390   :  { %v391_v7 = vpop.xlane.xlu0 %390 }
 0x391   :  { %5044 = vrcp.f32 %v391_v7 }
 0x39e   :  { %v5045_v8 = vpop.eup %5044 }
 0x39f   :  { %v393_v9 = vmul.f32 %v5045_v8, %v5043_v5 }
 0x3a1   :  { %v394_v12 = vpack.c.bf16 %v393_v9, %v393_v9 }
 0x3a3   :  { %4683 = vmatmul.mubr.msk.bf16.vlgmr.msra.gmra.mxu1 %vm396_vm7, %v394_v12 }
 0x3a4   :  { %4695 = vmatpush3.bf16.msra.mxu1 %v4887_v10  ;;  %4698 = vmatprep.mubr.msk.bf16.mxu1 %vm5093_vm2, %v5092_v1 }
 0x3a5   :  { %4696 = vmatprep.subr.bf16.mxu1 %v5092_v1 }
 0x3a8   :  { %4697 = vmatpush3.bf16.msra.mxu1 %v4888_v13 }
 0x3a9   :  { %4710 = vmatprep.subr.bf16.mxu1 %v5092_v1 }
 0x3ab   :  { %4699 = vmatmul.mubr.msk.bf16.vlgmr.msra.gmra.mxu1 %vm164_vm3, %v5270_v14 }
 0x3ac   :  { %4712 = vmatprep.mubr.msk.bf16.mxu1 %vm5093_vm2, %v5092_v1 }
 0x463   :  { %v441_v15 = vpop.f32.mrf.mxu1 }
 0x464   :  { %v448_v50 = vpack.c.bf16 %v441_v15, %v441_v15 }
 0x465   :  { %v4684_v16 = vpop.f32.mrf.mxu1 }
 0x466   :  { %v4119_v16 = vld [vmem:[%s6274_s2 + $0x2] ss:$0 sm:$0xff] }
 0x467   :  { %v444_v17 = vpop.f32.mrf.mxu1 }
 0x469   :  { %v4685_v18 = vpop.f32.mrf.mxu1 }
 0x46b   :  { %v573_v20 = vpop.f32.mrf.mxu1 }
 0x46c   :  { %v574_v21 = vadd.f32 %v4096_v19, %v573_v20 }
 0x46d   :  { %v4700_v22 = vpop.f32.mrf.mxu1 }
 0x46e   :  { %v645_v23 = vpack.c.bf16 %v574_v21, %v574_v21 }
 0x46f   :  { %v576_v25 = vpop.f32.mrf.mxu1 }
 0x470   :  { %v650_v26 = vsel %vm92_vm1, %v645_v23, 0  ;;  %v4137_v23 = vld [vmem:[%s6275_s7 + $0x2] ss:$0 sm:$0xff] }
 0x471   :  { %v4701_v27 = vpop.f32.mrf.mxu1  ;;  %4711 = vmatpush3.bf16.xpose.msra.mxu1 %v650_v26 }
 0x472   :  { %4722 = vmatprep.subr.bf16.mxu1 %v5092_v1 }
 0x478   :  { %4713 = vmatmul.mubr.msk.bf16.vlgmr.msra.gmra.mxu1 %vm92_vm1, %v644_v29 }
 0x479   :  { %4724 = vmatprep.mubr.msk.bf16.mxu1 %vm5093_vm2, %v5092_v1  ;;  %4723 = vmatpush3.bf16.msra.mxu1 %v758_v42  ;;  %v4143_v42 = vld [vmem:[%s6276_s27 + $0x8] sm:$0xf] }
 0x47a   :  { %4734 = vmatprep.subr.bf16.mxu1 %v5092_v1 }
 0x538   :  { %v686_v30 = vpop.f32.mrf.mxu1 }
 0x539   :  { %v692_v31 = vsel %vm382_vm6, %v686_v30, -inf }
 0x53a   :  { %693 = vmax.xlane.f32.xlu1 %v692_v31  ;;  %v4714_v32 = vpop.f32.mrf.mxu1 }
 0x53c   :  { %v689_v33 = vpop.f32.mrf.mxu1 }
 0x53e   :  { %v4715_v34 = vpop.f32.mrf.mxu1 }
 0x5c3   :  { %v694_v35 = vpop.xlane.xlu1 %693 }
 0x5c4   :  { %v695_v36 = vsub.f32 %v686_v30, %v694_v35 }
 0x5c6   :  { %v696_v38 = vmul.f32 1.442695, %v695_v36 }
 0x5c8   :  { %5046 = vpow2.f32 %v696_v38 }
 0x5d5   :  { %v5047_v39 = vpop.eup %5046 }
 0x5d6   :  { %v698_v40 = vsel %vm382_vm6, %v5047_v39, 0.0 }
 0x5d7   :  { %699 = vadd.xlane.f32.xlu1 %v698_v40 }
 0x660   :  { %v700_v43 = vpop.xlane.xlu1 %699 }
 0x661   :  { %5048 = vrcp.f32 %v700_v43  ;;  %v1155_v43 = vsel %vm96_vm0, %v4143_v42, 0 }
 0x66e   :  { %v5049_v44 = vpop.eup %5048 }
 0x66f   :  { %v702_v46 = vmul.f32 %v5049_v44, %v5047_v39 }
 0x671   :  { %v703_v47 = vpack.c.bf16 %v702_v46, %v702_v46 }
 0x673   :  { %4719 = vmatmul.mubr.msk.bf16.vlgmr.msra.gmra.mxu0 %vm396_vm7, %v703_v47  ;;  %v4895_v47 = vld [vmem:[%s6269_s8 + $0x38] sm:$0xff]  }
 0x674   :  { %4729 = vmatpush3.bf16.msra.mxu0 %v804_v48  ;;  %4730 = vmatprep.mubr.msk.bf16.mxu0 %vm5093_vm2, %v5092_v1 }
 0x675   :  { %4742 = vmatprep.subr.bf16.mxu0 %v5092_v1 }
 0x67b   :  { %4731 = vmatmul.mubr.msk.bf16.vlgmr.msra.gmra.mxu0 %vm92_vm1, %v448_v50  ;;  %v4897_v50 = vld [vmem:[%s6272_s26 + $0x38] sm:$0xff]  }
 0x67c   :  { %4743 = vmatpush3.bf16.msra.mxu0 %v4889_v49  ;;  %4746 = vmatprep.mubr.msk.bf16.mxu0 %vm5093_vm2, %v5092_v1  ;;  %v4896_v49 = vld [vmem:[%s6269_s8 + $0x30] sm:$0xff]  }
 0x67d   :  { %4744 = vmatprep.subr.bf16.mxu0 %v5092_v1 }
 0x680   :  { %4745 = vmatpush3.bf16.msra.mxu0 %v4890_v51  ;;  %v4898_v51 = vld [vmem:[%s6272_s26 + $0x30] sm:$0xff]  }
 0x681   :  { %4758 = vmatprep.subr.bf16.mxu0 %v5092_v1 }
 0x683   :  { %4747 = vmatmul.mubr.msk.bf16.vlgmr.msra.gmra.mxu0 %vm164_vm3, %v5270_v14 }
 0x684   :  { %4760 = vmatprep.mubr.msk.bf16.mxu0 %vm5093_vm2, %v5092_v1 }
 0x733   :  { %v745_v52 = vpop.f32.mrf.mxu0 }
 0x734   :  { %v753_v54 = vpack.c.bf16 %v745_v52, %v745_v52 }
 0x735   :  { %v4720_v55 = vpop.f32.mrf.mxu0 }
 0x736   :  { %4725 = vmatmul.mubr.msk.bf16.vlgmr.msra.gmra.mxu1 %vm92_vm1, %v753_v54 }
 0x737   :  { %v748_v56 = vpop.f32.mrf.mxu0  ;;  %4735 = vmatpush3.bf16.msra.mxu1 %v4891_v53  ;;  %4738 = vmatprep.mubr.msk.bf16.mxu1 %vm5093_vm2, %v5092_v1  ;;  %v4899_v53 = vld [vmem:[%s6270_s28 + $0x38] sm:$0xff]  }
 0x738   :  { %4736 = vmatprep.subr.bf16.mxu1 %v5092_v1 }
 0x739   :  { %v4721_v58 = vpop.f32.mrf.mxu0 }
 0x73b   :  { %v5404_v59 = vpop.f32.mrf.mxu0  ;;  %4737 = vmatpush3.bf16.msra.mxu1 %v4892_v57  ;;  %v4900_v57 = vld [vmem:[%s6270_s28 + $0x30] sm:$0xff]  }
 0x73c   :  { %4750 = vmatprep.subr.bf16.mxu1 %v5092_v1 }
 0x73d   :  { %v4732_v61 = vpop.f32.mrf.mxu0 }
 0x73e   :  { %4739 = vmatmul.mubr.msk.bf16.vlgmr.msra.gmra.mxu1 %vm164_vm3, %v5270_v14 }
 0x73f   :  { %v843_v62 = vpop.f32.mrf.mxu0  ;;  %4751 = vmatpush3.bf16.msra.mxu1 %v4893_v60  ;;  %4754 = vmatprep.mubr.msk.bf16.mxu1 %vm5093_vm2, %v5092_v1 }
 0x740   :  { %4752 = vmatprep.subr.bf16.mxu1 %v5092_v1 }
 0x741   :  { %v4733_v0 = vpop.f32.mrf.mxu0 }
 0x742   :  { %v4168_v0 = vld [vmem:[%s6275_s7 + $0x3] ss:$0 sm:$0xff] }
 0x743   :  { %v970_v3 = vpop.f32.mrf.mxu0  ;;  %4753 = vmatpush3.bf16.msra.mxu1 %v4894_v63 }
 0x744   :  { %v971_v4 = vadd.f32 %v4128_v2, %v970_v3  ;;  %4764 = vmatprep.subr.bf16.mxu1 %v5092_v1 }
 0x745   :  { %v4748_v5 = vpop.f32.mrf.mxu0 }
 0x746   :  { %v1042_v6 = vpack.c.bf16 %v971_v4, %v971_v4  ;;  %4755 = vmatmul.mubr.msk.bf16.vlgmr.msra.gmra.mxu1 %vm164_vm3, %v5270_v14 }
 0x747   :  { %v973_v7 = vpop.f32.mrf.mxu0  ;;  %4766 = vmatprep.mubr.msk.bf16.mxu1 %vm5093_vm2, %v5092_v1 }
 0x748   :  { %v1047_v8 = vsel %vm92_vm1, %v1042_v6, 0 }
 0x749   :  { %v4749_v9 = vpop.f32.mrf.mxu0  ;;  %4759 = vmatpush3.bf16.xpose.msra.mxu0 %v1047_v8 }
 0x74a   :  { %4770 = vmatprep.subr.bf16.mxu0 %v5092_v1 }
 0x7f6   :  { %v5428_v10 = vpop.f32.mrf.mxu1 }
 0x7f8   :  { %v4726_v12 = vpop.f32.mrf.mxu1 }
 0x7fa   :  { %v797_v13 = vpop.f32.mrf.mxu1 }
 0x7fc   :  { %v4727_v15 = vpop.f32.mrf.mxu1 }
 0x7fe   :  { %v905_v17 = vpop.f32.mrf.mxu1 }
 0x7ff   :  { %v906_v18 = vadd.f32 %v4119_v16, %v905_v17  ;;  %v4159_v17 = vld [vmem:[%s6273_s5 + $0x3] ss:$0 sm:$0xff] }
 0x800   :  { %v4740_v19 = vpop.f32.mrf.mxu1 }
 0x801   :  { %v1041_v20 = vpack.c.bf16 %v906_v18, %v906_v18 }
 0x802   :  { %v908_v21 = vpop.f32.mrf.mxu1 }
 0x803   :  { %4761 = vmatmul.mubr.msk.bf16.vlgmr.msra.gmra.mxu0 %vm92_vm1, %v1041_v20 }
 0x804   :  { %v4741_v22 = vpop.f32.mrf.mxu1  ;;  %4772 = vmatprep.mubr.msk.bf16.mxu0 %vm5093_vm2, %v5092_v1  ;;  %4771 = vmatpush3.bf16.msra.mxu0 %v1155_v43 }
 0x805   :  { %4784 = vmatprep.subr.bf16.mxu0 %v5092_v1 }
 0x806   :  { %v1035_v24 = vpop.f32.mrf.mxu1 }
 0x807   :  { %v1036_v25 = vadd.f32 %v4137_v23, %v1035_v24 }
 0x808   :  { %v4756_v26 = vpop.f32.mrf.mxu1 }
 0x809   :  { %v1101_v27 = vpack.c.bf16 %v1036_v25, %v1036_v25 }
 0x80a   :  { %v1038_v28 = vpop.f32.mrf.mxu1 }
 0x80b   :  { %v1106_v29 = vand.u32 %v1101_v27, %v5300_v37 }
 0x80c   :  { %v4757_v30 = vpop.f32.mrf.mxu1 }
 0x80d   :  { %4765 = vmatpush3.bf16.msra.mxu1 %v1106_v29 }
 0x80e   :  { %4776 = vmatprep.subr.bf16.mxu1 %v5092_v1 }
 0x8c3   :  { %v1083_v31 = vpop.f32.mrf.mxu0 }
 0x8c4   :  { %v1089_v32 = vsel %vm382_vm6, %v1083_v31, -inf }
 0x8c5   :  { %1090 = vmax.xlane.f32.xlu0 %v1089_v32  ;;  %v4762_v33 = vpop.f32.mrf.mxu0 }
 0x8c7   :  { %v1086_v34 = vpop.f32.mrf.mxu0 }
 0x8c9   :  { %v4763_v35 = vpop.f32.mrf.mxu0 }
 0x8ca   :  { %v4174_v35 = vld [vmem:[%s6276_s27 + $0xc] sm:$0xf] }
 0x94e   :  { %v1091_v36 = vpop.xlane.xlu0 %1090 }
 0x94f   :  { %v1092_v38 = vsub.f32 %v1083_v31, %v1091_v36  ;;  %v1507_v36 = vsel %vm96_vm0, %v4174_v35, 0 }
 0x951   :  { %v1093_v39 = vmul.f32 1.442695, %v1092_v38 }
 0x953   :  { %5050 = vpow2.f32 %v1093_v39 }
 0x960   :  { %v5051_v40 = vpop.eup %5050 }
 0x961   :  { %v1095_v41 = vsel %vm382_vm6, %v5051_v40, 0.0 }
 0x962   :  { %1096 = vadd.xlane.f32.xlu1 %v1095_v41 }
 0x9eb   :  { %v1097_v44 = vpop.xlane.xlu1 %1096 }
 0x9ec   :  { %5052 = vrcp.f32 %v1097_v44 }
 0x9f9   :  { %v5053_v45 = vpop.eup %5052 }
 0x9fa   :  { %v1099_v46 = vmul.f32 %v5053_v45, %v5051_v40 }
 0x9fc   :  { %v1100_v48 = vpack.c.bf16 %v1099_v46, %v1099_v46 }
 0x9fe   :  { %4767 = vmatmul.mubr.msk.bf16.vlgmr.msra.gmra.mxu1 %vm396_vm7, %v1100_v48  ;;  %v4176_v48 = vld [vmem:[%s6234_s10] ss:$0 sm:$0xff] }
 0x9ff   :  { %4777 = vmatpush3.bf16.msra.mxu1 %v4895_v47  ;;  %4780 = vmatprep.mubr.msk.bf16.mxu1 %vm5093_vm2, %v5092_v1 }
 0xa00   :  { %4778 = vmatprep.subr.bf16.mxu1 %v5092_v1 }
 0xa03   :  { %4779 = vmatpush3.bf16.msra.mxu1 %v4896_v49 }
 0xa04   :  { %4792 = vmatprep.subr.bf16.mxu1 %v5092_v1 }
 0xa06   :  { %4781 = vmatmul.mubr.msk.bf16.vlgmr.msra.gmra.mxu1 %vm164_vm3, %v5270_v14 }
 0xa07   :  { %4793 = vmatpush3.bf16.msra.mxu1 %v4897_v50  ;;  %4796 = vmatprep.mubr.msk.bf16.mxu1 %vm5093_vm2, %v5092_v1 }
 0xa08   :  { %4794 = vmatprep.subr.bf16.mxu1 %v5092_v1 }
 0xa0b   :  { %4795 = vmatpush3.bf16.msra.mxu1 %v4898_v51 }
 0xa0c   :  { %4806 = vmatprep.subr.bf16.mxu1 %v5092_v1 }
 0xa0e   :  { %4797 = vmatmul.mubr.msk.bf16.vlgmr.msra.gmra.mxu1 %vm164_vm3, %v5270_v14 }
 0xa0f   :  { %4808 = vmatprep.mubr.msk.bf16.mxu1 %vm5093_vm2, %v5092_v1 }
 0xabe   :  { %v1142_v52 = vpop.f32.mrf.mxu1 }
 0xabf   :  { %v1150_v54 = vpack.c.bf16 %v1142_v52, %v1142_v52 }
 0xac0   :  { %v4768_v55 = vpop.f32.mrf.mxu1 }
 0xac1   :  { %4773 = vmatmul.mubr.msk.bf16.vlgmr.msra.gmra.mxu0 %vm92_vm1, %v1150_v54 }
 0xac2   :  { %v1145_v56 = vpop.f32.mrf.mxu1  ;;  %4785 = vmatpush3.bf16.msra.mxu0 %v4899_v53  ;;  %4788 = vmatprep.mubr.msk.bf16.mxu0 %vm5093_vm2, %v5092_v1 }
 0xac3   :  { %4786 = vmatprep.subr.bf16.mxu0 %v5092_v1 }
 0xac4   :  { %v4769_v58 = vpop.f32.mrf.mxu1 }
 0xac6   :  { %v1257_v60 = vpop.f32.mrf.mxu1  ;;  %4787 = vmatpush3.bf16.msra.mxu0 %v4900_v57 }
 0xac7   :  { %4800 = vmatprep.subr.bf16.mxu0 %v5092_v1 }
 0xac8   :  { %v4782_v61 = vpop.f32.mrf.mxu1 }
 0xac9   :  { %4789 = vmatmul.mubr.msk.bf16.vlgmr.msra.gmra.mxu0 %vm164_vm3, %v5270_v14  ;;  %v841_v14 = vadd.f32 %v5404_v59, %v5428_v10 }
 0xaca   :  { %v1260_v62 = vpop.f32.mrf.mxu1  ;;  %4802 = vmatprep.mubr.msk.bf16.mxu0 %vm5093_vm2, %v5092_v1 }
 0xacb   :  { %v1606_v62 = vld [vmem:[%s6239_s15 + $0x80] sm:$0xff] }
 0xacc   :  { %v4783_v63 = vpop.f32.mrf.mxu1 }
 0xacd   :  { %v1614_v63 = vld [vmem:[%s6239_s15 + $0xc0] sm:$0xff] }
 0xace   :  { %v1387_v2 = vpop.f32.mrf.mxu1 }
 0xacf   :  { %v1388_v3 = vadd.f32 %v4168_v0, %v1387_v2  ;;  %v4196_v0 = vcombine.high %v1606_v62, %v1614_v63  ;;  %v1615_v2 = vld [vmem:[%s6239_s15 + $0xc8] sm:$0xff] }
 0xad0   :  { %v4798_v4 = vpop.f32.mrf.mxu1 }
 0xad1   :  { %v1453_v5 = vpack.c.bf16 %v1388_v3, %v1388_v3  ;;  %v4195_v3 = vcombine.low %v1606_v62, %v1614_v63 }
 0xad2   :  { %v1390_v6 = vpop.f32.mrf.mxu1 }
 0xad3   :  { %v1458_v7 = vand.u32 %v1453_v5, %v5300_v37  ;;  %v4150_v37 = vld [vmem:[%s6274_s2 + $0x3] ss:$0 sm:$0xff] }
 0xad4   :  { %v4799_v8 = vpop.f32.mrf.mxu1  ;;  %v1258_v23 = vadd.f32 %v4150_v37, %v1257_v60  ;;  %v1590_v6 = vld [vmem:[%s6239_s15] sm:$0xff] }
 0xad5   :  { %4807 = vmatpush3.bf16.msra.mxu1 %v1458_v7  ;;  %v1598_v7 = vld [vmem:[%s6239_s15 + $0x40] sm:$0xff]  ;;  %v1591_v8 = vld [vmem:[%s6239_s15 + $0x8] sm:$0xff] }
 0xad6   :  { %v1393_v24 = vpack.c.bf16 %v1258_v23, %v1258_v23  ;;  %1882 = vmatprep.subr.bf16.mxu1 %v4196_v0  ;;  %v1604_v0 = vld [vmem:[%s6239_s15 + $0x70] sm:$0xff] }
 0xb81   :  { %v1191_v9 = vpop.f32.mrf.mxu0 }
 0xb82   :  { %v1197_v12 = vadd.f32 %v1191_v9, %v841_v14  ;;  %v4180_v14 = vcombine.high %v1590_v6, %v1598_v7  ;;  %v1599_v9 = vld [vmem:[%s6239_s15 + $0x48] sm:$0xff] }
 0xb83   :  { %v4774_v13 = vpop.f32.mrf.mxu0 }
 0xb84   :  { %v4181_v13 = vcombine.low %v1591_v8, %v1599_v9 }
 0xb85   :  { %v1194_v15 = vpop.f32.mrf.mxu0 }
 0xb86   :  { %v4182_v15 = vcombine.high %v1591_v8, %v1599_v9  ;;  %v4901_v9 = vld [vmem:[%s6241_s17 + $0x78] sm:$0xff]  }
 0xb87   :  { %v4775_v16 = vpop.f32.mrf.mxu0 }
 0xb88   :  { %v1608_v16 = vld [vmem:[%s6239_s15 + $0x90] sm:$0xff] }
 0xb89   :  { %v1322_v18 = vpop.f32.mrf.mxu0 }
 0xb8a   :  { %v1323_v19 = vadd.f32 %v4159_v17, %v1322_v18  ;;  %v1616_v17 = vld [vmem:[%s6239_s15 + $0xd0] sm:$0xff]  ;;  %v1609_v18 = vld [vmem:[%s6239_s15 + $0x98] sm:$0xff] }
 0xb8b   :  { %v4790_v20 = vpop.f32.mrf.mxu0  ;;  %v4199_v37 = vcombine.low %v1608_v16, %v1616_v17 }
 0xb8c   :  { %v1394_v21 = vpack.c.bf16 %v1323_v19, %v1323_v19  ;;  %v4200_v19 = vcombine.high %v1608_v16, %v1616_v17  ;;  %v1617_v20 = vld [vmem:[%s6239_s15 + $0xd8] sm:$0xff]  ;;  %v4905_v16 = vld [vmem:[%s6241_s17 + $0x70] sm:$0xff]  }
 0xb8d   :  { %v1325_v22 = vpop.f32.mrf.mxu0  ;;  %v4906_v17 = vld [vmem:[%s6241_s17 + $0xf0] sm:$0xff]  }
 0xb8e   :  { %v1399_v59 = vsel %vm92_vm1, %v1394_v21, 0  ;;  %v5095_v21 = vmov 0   ;;  %v4201_v22 = vcombine.low %v1609_v18, %v1617_v20 }
 0xb8f   :  { %v4791_v10 = vpop.f32.mrf.mxu0  ;;  %4801 = vmatpush3.bf16.xpose.msra.mxu0 %v1399_v59  ;;  %v4202_v59 = vcombine.high %v1609_v18, %v1617_v20  ;;  %v4907_v18 = vld [vmem:[%s6241_s17 + $0x30] sm:$0xff]   ;;  %v4909_v20 = vld [vmem:[%s6241_s17 + $0x68] sm:$0xff]  }
 0xb90   :  { %4812 = vmatprep.subr.bf16.mxu0 %v5092_v1 }
 0xb96   :  { %4803 = vmatmul.mubr.msk.bf16.vlgmr.msra.gmra.mxu0 %vm92_vm1, %v1393_v24 }
 0xb97   :  { %4814 = vmatprep.mubr.msk.bf16.mxu0 %vm5093_vm2, %v5092_v1  ;;  %4813 = vmatpush3.bf16.msra.mxu0 %v1507_v36 }
 0xc56   :  { %v1435_v25 = vpop.f32.mrf.mxu0 }
 0xc57   :  { %v1441_v26 = vsel %vm382_vm6, %v1435_v25, -inf }
 0xc58   :  { %1442 = vmax.xlane.f32.xlu0 %v1441_v26  ;;  %v4804_v27 = vpop.f32.mrf.mxu0  ;;  %v4177_v26 = vld [vmem:[%s6235_s11] ss:$0 sm:$0xff] }
 0xc5a   :  { %v1438_v28 = vpop.f32.mrf.mxu0 }
 0xc5b   :  { %v4178_v28 = vld [vmem:[%s6236_s12] ss:$0 sm:$0xff] }
 0xc5c   :  { %v4805_v29 = vpop.f32.mrf.mxu0 }
 0xce1   :  { %v1443_v30 = vpop.xlane.xlu0 %1442 }
 0xce2   :  { %v1444_v31 = vsub.f32 %v1435_v25, %v1443_v30  ;;  %v1592_v30 = vld [vmem:[%s6239_s15 + $0x10] sm:$0xff] }
 0xce4   :  { %v1445_v32 = vmul.f32 1.442695, %v1444_v31  ;;  %v1600_v31 = vld [vmem:[%s6239_s15 + $0x50] sm:$0xff] }
 0xce5   :  { %v4184_v36 = vcombine.high %v1592_v30, %v1600_v31 }
 0xce6   :  { %5054 = vpow2.f32 %v1445_v32  ;;  %v1593_v32 = vld [vmem:[%s6239_s15 + $0x18] sm:$0xff] }
 0xcf3   :  { %v5055_v33 = vpop.eup %5054 }
 0xcf4   :  { %v1447_v34 = vsel %vm382_vm6, %v5055_v33, 0.0 }
 0xcf5   :  { %1448 = vadd.xlane.f32.xlu1 %v1447_v34 }
 0xd7e   :  { %v1449_v38 = vpop.xlane.xlu1 %1448 }
 0xd7f   :  { %5056 = vrcp.f32 %v1449_v38 }
 0xd8c   :  { %v5057_v39 = vpop.eup %5056 }
 0xd8d   :  { %v1451_v40 = vmul.f32 %v5057_v39, %v5055_v33  ;;  %v1601_v33 = vld [vmem:[%s6239_s15 + $0x58] sm:$0xff]  ;;  %v1610_v39 = vld [vmem:[%s6239_s15 + $0xa0] sm:$0xff] }
 0xd8e   :  { %v4186_v38 = vcombine.high %v1593_v32, %v1601_v33 }
 0xd8f   :  { %v1452_v41 = vpack.c.bf16 %v1451_v40, %v1451_v40  ;;  %v1618_v40 = vld [vmem:[%s6239_s15 + $0xe0] sm:$0xff] }
 0xd91   :  { %4809 = vmatmul.mubr.msk.bf16.vlgmr.msra.gmra.mxu1 %vm396_vm7, %v1452_v41  ;;  %v1611_v41 = vld [vmem:[%s6239_s15 + $0xa8] sm:$0xff] }
 0xd92   :  { %1883 = vmatpush1.bf16.msra.mxu1 %v4195_v3  ;;  %1902 = vmatprep.mubr.bf16.mxu1 %v5095_v21  ;;  %v1605_v3 = vld [vmem:[%s6239_s15 + $0x78] sm:$0xff] }
 0xd93   :  { %1884 = vmatprep.subr.bf16.mxu1 %v4180_v14 }
 0xe51   :  { %v1494_v42 = vpop.f32.mrf.mxu1 }
 0xe52   :  { %v1502_v43 = vpack.c.bf16 %v1494_v42, %v1494_v42  ;;  %v1619_v42 = vld [vmem:[%s6239_s15 + $0xe8] sm:$0xff] }
 0xe53   :  { %v4810_v44 = vpop.f32.mrf.mxu1 }
 0xe54   :  { %4815 = vmatmul.mubr.msk.bf16.vlgmr.msra.gmra.mxu0 %vm92_vm1, %v1502_v43  ;;  %v4183_v43 = vcombine.low %v1592_v30, %v1600_v31  ;;  %v4185_v44 = vcombine.low %v1593_v32, %v1601_v33  ;;  %v4922_v30 = vld [vmem:[%s6241_s17 + $0xd0] sm:$0xff]   ;;  %v4925_v33 = vld [vmem:[%s6241_s17 + $0x48] sm:$0xff]  }
 0xe55   :  { %v1497_v45 = vpop.f32.mrf.mxu1  ;;  %1943 = vmatprep.mubr.bf16.mxu0 %v5095_v21  ;;  %v4923_v31 = vld [vmem:[%s6241_s17 + $0x10] sm:$0xff]  }
 0xe56   :  { %v4204_v45 = vcombine.high %v1610_v39, %v1618_v40  ;;  %v4924_v32 = vld [vmem:[%s6241_s17 + $0x90] sm:$0xff]  }
 0xe57   :  { %v4811_v46 = vpop.f32.mrf.mxu1 }
 0xe58   :  { %v4206_v46 = vcombine.high %v1611_v41, %v1619_v42 }
 0xf14   :  { %v1543_v47 = vpop.f32.mrf.mxu0 }
 0xf15   :  { %v1549_v49 = vadd.f32 %v1543_v47, %v1197_v12  ;;  %v4179_v12 = vcombine.low %v1590_v6, %v1598_v7  ;;  %v1594_v47 = vld [vmem:[%s6239_s15 + $0x20] sm:$0xff] }
 0xf16   :  { %v4816_v50 = vpop.f32.mrf.mxu0 }
 0xf17   :  { %v1557_v51 = vadd.f32 %v4176_v48, %v1549_v49  ;;  %1885 = vmatpush1.bf16.msra.mxu1 %v4179_v12  ;;  %v1602_v48 = vld [vmem:[%s6239_s15 + $0x60] sm:$0xff]  ;;  %v1595_v49 = vld [vmem:[%s6239_s15 + $0x28] sm:$0xff]  ;;  %v4902_v12 = vld [vmem:[%s6241_s17 + $0xf8] sm:$0xff]  }
 0xf18   :  { %v1546_v52 = vpop.f32.mrf.mxu0  ;;  %1964 = vmatprep.subr.bf16.mxu1 %v4200_v19  ;;  %v1603_v50 = vld [vmem:[%s6239_s15 + $0x68] sm:$0xff]  ;;  %v4908_v19 = vld [vmem:[%s6241_s17 + $0xb0] sm:$0xff]  }
 0xf19   :  { %v1558_v53 = vadd.f32 %v1557_v51, %v5263_v11  ;;  %v1607_v11 = vld [vmem:[%s6239_s15 + $0x88] sm:$0xff]  ;;  %v4203_v51 = vcombine.low %v1610_v39, %v1618_v40  ;;  %v4205_v52 = vcombine.low %v1611_v41, %v1619_v42  ;;  %v4929_v39 = vld [vmem:[%s6241_s17 + $0x40] sm:$0xff]  }
 0xf1a   :  { %v4817_v54 = vpop.f32.mrf.mxu0  ;;  %v4197_v4 = vcombine.low %v1607_v11, %v1615_v2  ;;  %v4198_v5 = vcombine.high %v1607_v11, %v1615_v2  ;;  %v1596_v11 = vld [vmem:[%s6239_s15 + $0x30] sm:$0xff]  ;;  %v1597_v2 = vld [vmem:[%s6239_s15 + $0x38] sm:$0xff]  ;;  %v4930_v40 = vld [vmem:[%s6241_s17 + $0xc0] sm:$0xff]  }
 0xf1b   :  { %v1562_v55 = vsel %vm1561_vm8, %v1558_v53, 0.0  ;;  %v4190_v54 = vcombine.high %v1595_v49, %v1603_v50  ;;  %v4192_v6 = vcombine.high %v1596_v11, %v1604_v0  ;;  %v4194_v7 = vcombine.high %v1597_v2, %v1605_v3  ;;  %v4931_v41 = vld [vmem:[%s6241_s17] sm:$0xff]  }
 0xf1c   :  { %1563 = vadd.xlane.f32.xlu0 %v1562_v55  ;;  %1923 = vmatprep.subr.bf16.mxu0 %v4198_v5  ;;  %v1612_v55 = vld [vmem:[%s6239_s15 + $0xb0] sm:$0xff]  ;;  %v4191_v8 = vcombine.low %v1596_v11, %v1604_v0  ;;  %v4193_v14 = vcombine.low %v1597_v2, %v1605_v3  ;;  %v4932_v42 = vld [vmem:[%s6241_s17 + $0x80] sm:$0xff]  }
 0xf1d   :  { %1924 = vmatpush1.bf16.msra.mxu0 %v4197_v4 }
 0xf1e   :  { %1925 = vmatprep.subr.bf16.mxu0 %v4182_v15  ;;  %v4904_v15 = vld [vmem:[%s6241_s17 + $0xb8] sm:$0xff]  }
 0xf21   :  { %1926 = vmatpush1.bf16.msra.mxu0 %v4181_v13  ;;  %v4903_v13 = vld [vmem:[%s6241_s17 + $0x38] sm:$0xff]  }
 0xf22   :  { %2005 = vmatprep.subr.bf16.mxu0 %v4202_v59  ;;  %v4913_v59 = vld [vmem:[%s6241_s17 + $0x60] sm:$0xff]  }
 0xfa5   :  { %v1564_v56 = vpop.xlane.xlu0 %1563 }
 0xfa6   :  { %v1566_v57 = vmul.f32 0.03125, %v1564_v56  ;;  %v1620_v56 = vld [vmem:[%s6239_s15 + $0xf0] sm:$0xff] }
 0xfa7   :  { %v4208_v62 = vcombine.high %v1612_v55, %v1620_v56  ;;  %v4207_v4 = vcombine.low %v1612_v55, %v1620_v56 }
 0xfa8   :  { %v1567_v58 = vsub.f32 %v1558_v53, %v1566_v57  ;;  %v4188_v53 = vcombine.high %v1594_v47, %v1602_v48  ;;  %v1613_v57 = vld [vmem:[%s6239_s15 + $0xb8] sm:$0xff] }
 0xfaa   :  { %v1568_v60 = vmul.f32 %v1567_v58, %v1567_v58 }
 0xfac   :  { %v1569_v61 = vsel %vm1561_vm8, %v1568_v60, 0.0  ;;  %v4187_v60 = vcombine.low %v1594_v47, %v1602_v48  ;;  %v5761_v48 = vld [vmem:[%s6240_s16 + $0x8] sm:$0xff] }
 0xfad   :  { %1570 = vadd.xlane.f32.xlu1 %v1569_v61  ;;  %v4189_v61 = vcombine.low %v1595_v49, %v1603_v50 }
0x1036   :  { %v1571_v10 = vpop.xlane.xlu1 %1570 }
0x1037   :  { %v1572_v23 = vmul.f32 0.03125, %v1571_v10  ;;  %v4914_v10 = vld [vmem:[%s6241_s17 + $0xe0] sm:$0xff]  }
0x1039   :  { %v1573_v24 = vadd.f32 1e-05, %v1572_v23  ;;  %v4915_v23 = vld [vmem:[%s6241_s17 + $0x20] sm:$0xff]  }
0x103b   :  { %5058 = vrsqrt.f32 %v1573_v24  ;;  %v4916_v24 = vld [vmem:[%s6241_s17 + $0xa0] sm:$0xff]  }
0x1048   :  { %v5059_v25 = vpop.eup %5058 }
0x1049   :  { %v1575_v27 = vmul.f32 %v5059_v25, %v1567_v58  ;;  %v1621_v58 = vld [vmem:[%s6239_s15 + $0xf8] sm:$0xff] }
0x104a   :  { %v4210_v63 = vcombine.high %v1613_v57, %v1621_v58  ;;  %v4209_v5 = vcombine.low %v1613_v57, %v1621_v58  ;;  %v4917_v25 = vld [vmem:[%s6241_s17 + $0x58] sm:$0xff]  }
0x104b   :  { %v1582_v29 = vmul.f32 %v4177_v26, %v1575_v27  ;;  %v4918_v26 = vld [vmem:[%s6241_s17 + $0xd8] sm:$0xff]  }
0x104c   :  { %v4919_v27 = vld [vmem:[%s6241_s17 + $0x18] sm:$0xff]  }
0x104d   :  { %v5577_v34 = vadd.f32 %v4178_v28, %v1582_v29  ;;  %v4920_v28 = vld [vmem:[%s6241_s17 + $0x98] sm:$0xff]   ;;  %v4921_v29 = vld [vmem:[%s6241_s17 + $0x50] sm:$0xff]  }
0x104f   :  { %v5581_v35 = vpack.c.bf16 %v5577_v34, %v5577_v34 }
0x1051   :  { %4211 = vmatmul.mubr.msk.bf16.vlgmr.msra.gmra.mxu1 %vm164_vm3, %v5581_v35  ;;  %4212 = vmatmul.mubr.msk.bf16.vlgmr.msra.gmra.mxu0 %vm164_vm3, %v5581_v35 }
0x1052   :  { %1965 = vmatpush1.bf16.msra.mxu1 %v4199_v37  ;;  %2006 = vmatpush1.bf16.msra.mxu0 %v4201_v22  ;;  %v4911_v37 = vld [vmem:[%s6241_s17 + $0x28] sm:$0xff]  }
0x1053   :  { %1966 = vmatprep.subr.bf16.mxu1 %v4184_v36  ;;  %2007 = vmatprep.subr.bf16.mxu0 %v4186_v38  ;;  %v4912_v22 = vld [vmem:[%s6241_s17 + $0xa8] sm:$0xff]  }
0x1054   :  { %1984 = vmatprep.mubr.bf16.mxu1 %v5095_v21  ;;  %2025 = vmatprep.mubr.bf16.mxu0 %v5095_v21  ;;  %v4927_v36 = vld [vmem:[%s6241_s17 + $0x8] sm:$0xff]  }
0x1055   :  { %v4928_v38 = vld [vmem:[%s6241_s17 + $0x88] sm:$0xff]  }
0x1056   :  { %1967 = vmatpush1.bf16.msra.mxu1 %v4183_v43  ;;  %2008 = vmatpush1.bf16.msra.mxu0 %v4185_v44  ;;  %v4933_v43 = vld [vmem:[%s6241_s17 + $0x178] sm:$0xff]  }
0x1057   :  { %2046 = vmatprep.subr.bf16.mxu1 %v4204_v45  ;;  %2087 = vmatprep.subr.bf16.mxu0 %v4206_v46  ;;  %v4934_v44 = vld [vmem:[%s6241_s17 + $0x1f8] sm:$0xff]   ;;  %v1627_v45 = vlaneseq }
0x1059   :  { %4213 = vmatmul.mubr.msk.bf16.vlgmr.msra.gmra.mxu1 %vm164_vm3, %v5581_v35  ;;  %4214 = vmatmul.mubr.msk.bf16.vlgmr.msra.gmra.mxu0 %vm164_vm3, %v5581_v35  ;;  %v5755_v46 = vshrl.u32 %v1627_v45, 7 }
0x105a   :  { %2047 = vmatpush1.bf16.msra.mxu1 %v4203_v51  ;;  %2088 = vmatpush1.bf16.msra.mxu0 %v4205_v52  ;;  %v5773_v52 = vld [vmem:[%s6240_s16] sm:$0xff] }
0x105b   :  { %2048 = vmatprep.subr.bf16.mxu1 %v4188_v53  ;;  %2089 = vmatprep.subr.bf16.mxu0 %v4190_v54  ;;  %v1653_v47 = vsub.s32 6, %v5755_v46  ;;  %v1629_v50 = vsub.s32 0, %v5755_v46  ;;  %v1637_v51 = vsub.s32 2, %v5755_v46  ;;  %v1633_v53 = vsub.s32 1, %v5755_v46 }
0x105c   :  { %2066 = vmatprep.mubr.bf16.mxu1 %v5095_v21  ;;  %2107 = vmatprep.mubr.bf16.mxu0 %v5095_v21  ;;  %v1641_v54 = vsub.s32 3, %v5755_v46 }
0x105d   :  { %v5766_v49 = vrot.slane %v5761_v48, %v1653_v47  ;;  %v1630_v55 = vrot.slane %v5773_v52, %v1629_v50  ;;  %v1638_v56 = vrot.slane %v5773_v52, %v1637_v51  ;;  %v1634_v57 = vrot.slane %v5773_v52, %v1633_v53 }
0x105e   :  { %2049 = vmatpush1.bf16.msra.mxu1 %v4187_v60  ;;  %2090 = vmatpush1.bf16.msra.mxu0 %v4189_v61  ;;  %v1642_v58 = vrot.slane %v5773_v52, %v1641_v54 }
0x105f   :  { %2128 = vmatprep.subr.bf16.mxu1 %v4208_v62  ;;  %2169 = vmatprep.subr.bf16.mxu0 %v4210_v63 }
0x1061   :  { %4215 = vmatmul.mubr.msk.bf16.vlgmr.msra.gmra.mxu1 %vm164_vm3, %v5581_v35  ;;  %4216 = vmatmul.mubr.msk.bf16.vlgmr.msra.gmra.mxu0 %vm164_vm3, %v5581_v35 }
0x1062   :  { %2129 = vmatpush1.bf16.msra.mxu1 %v4207_v4  ;;  %2170 = vmatpush1.bf16.msra.mxu0 %v4209_v5  ;;  %v1649_v4 = vsub.s32 5, %v5755_v46  ;;  %v1657_v5 = vsub.s32 7, %v5755_v46 }
0x1063   :  { %2130 = vmatprep.subr.bf16.mxu1 %v4192_v6  ;;  %2171 = vmatprep.subr.bf16.mxu0 %v4194_v7 }
0x1064   :  { %2148 = vmatprep.mubr.bf16.mxu1 %v5095_v21  ;;  %2189 = vmatprep.mubr.bf16.mxu0 %v5095_v21  ;;  %v4910_v21 = vld [vmem:[%s6241_s17 + $0xe8] sm:$0xff]  }
0x1066   :  { %2131 = vmatpush1.bf16.msra.mxu1 %v4191_v8  ;;  %2172 = vmatpush1.bf16.msra.mxu0 %v4193_v14 }
0x1067   :  { %4448 = vmatprep.subr.bf16.mxu1 %v4901_v9  ;;  %4470 = vmatprep.subr.bf16.mxu0 %v4902_v12 }
0x1069   :  { %4217 = vmatmul.mubr.msk.bf16.vlgmr.msra.gmra.mxu1 %vm164_vm3, %v5581_v35  ;;  %4218 = vmatmul.mubr.msk.bf16.vlgmr.msra.gmra.mxu0 %vm164_vm3, %v5581_v35  ;;  %v4926_v35 = vld [vmem:[%s6241_s17 + $0xc8] sm:$0xff]  }
0x106a   :  { %4449 = vmatpush3.bf16.msra.mxu1 %v4903_v13  ;;  %4471 = vmatpush3.bf16.msra.mxu0 %v4904_v15 }
0x106b   :  { %4450 = vmatprep.subr.bf16.mxu1 %v4905_v16  ;;  %4472 = vmatprep.subr.bf16.mxu0 %v4906_v17 }
0x106e   :  { %4451 = vmatpush3.bf16.msra.mxu1 %v4907_v18  ;;  %4473 = vmatpush3.bf16.msra.mxu0 %v4908_v19  ;;  %v1650_v18 = vrot.slane %v5773_v52, %v1649_v4  ;;  %v1658_v19 = vrot.slane %v5773_v52, %v1657_v5 }
0x106f   :  { %4452 = vmatprep.subr.bf16.mxu1 %v4909_v20  ;;  %4474 = vmatprep.subr.bf16.mxu0 %v4910_v21  ;;  %v4935_v20 = vld [vmem:[%s6241_s17 + $0x138] sm:$0xff]  }
0x1070   :  { %v4936_v21 = vld [vmem:[%s6241_s17 + $0x1b8] sm:$0xff]  }
0x1072   :  { %4453 = vmatpush3.bf16.msra.mxu1 %v4911_v37  ;;  %4475 = vmatpush3.bf16.msra.mxu0 %v4912_v22 }
0x1073   :  { %4454 = vmatprep.subr.bf16.mxu1 %v4913_v59  ;;  %4476 = vmatprep.subr.bf16.mxu0 %v4914_v10 }
0x1076   :  { %4455 = vmatpush3.bf16.msra.mxu1 %v4915_v23  ;;  %4477 = vmatpush3.bf16.msra.mxu0 %v4916_v24  ;;  %v4937_v23 = vld [vmem:[%s6241_s17 + $0x170] sm:$0xff]  }
0x1077   :  { %4456 = vmatprep.subr.bf16.mxu1 %v4917_v25  ;;  %4478 = vmatprep.subr.bf16.mxu0 %v4918_v26  ;;  %v4938_v24 = vld [vmem:[%s6241_s17 + $0x1f0] sm:$0xff]  }
0x107a   :  { %4457 = vmatpush3.bf16.msra.mxu1 %v4919_v27  ;;  %4479 = vmatpush3.bf16.msra.mxu0 %v4920_v28 }
0x107b   :  { %4458 = vmatprep.subr.bf16.mxu1 %v4921_v29  ;;  %4480 = vmatprep.subr.bf16.mxu0 %v4922_v30  ;;  %v4939_v29 = vld [vmem:[%s6241_s17 + $0x130] sm:$0xff]  }
0x107c   :  { %v4940_v30 = vld [vmem:[%s6241_s17 + $0x1b0] sm:$0xff]  }
0x107e   :  { %4459 = vmatpush3.bf16.msra.mxu1 %v4923_v31  ;;  %4481 = vmatpush3.bf16.msra.mxu0 %v4924_v32 }
0x107f   :  { %4460 = vmatprep.subr.bf16.mxu1 %v4925_v33  ;;  %4482 = vmatprep.subr.bf16.mxu0 %v4926_v35  ;;  %v4941_v33 = vld [vmem:[%s6241_s17 + $0x168] sm:$0xff]  }
0x1080   :  { %v4942_v35 = vld [vmem:[%s6241_s17 + $0x1e8] sm:$0xff]  }
0x1082   :  { %4461 = vmatpush3.bf16.msra.mxu1 %v4927_v36  ;;  %4483 = vmatpush3.bf16.msra.mxu0 %v4928_v38 }
0x1083   :  { %4462 = vmatprep.subr.bf16.mxu1 %v4929_v39  ;;  %4484 = vmatprep.subr.bf16.mxu0 %v4930_v40 }
0x1086   :  { %4463 = vmatpush3.bf16.msra.mxu1 %v4931_v41  ;;  %4485 = vmatpush3.bf16.msra.mxu0 %v4932_v42 }
0x1087   :  { %4492 = vmatprep.subr.bf16.mxu1 %v4933_v43  ;;  %4514 = vmatprep.subr.bf16.mxu0 %v4934_v44  ;;  %v4943_v43 = vld [vmem:[%s6241_s17 + $0x128] sm:$0xff]  }
0x1088   :  { %v4944_v44 = vld [vmem:[%s6241_s17 + $0x1a8] sm:$0xff]  }
0x1111   :  { %v1904_v60 = vpop.f32.mrf.mxu1  ;;  %v1945_v61 = vpop.f32.mrf.mxu0 }
0x1112   :  { %v1905_v62 = vadd.f32 %v1904_v60, %v1630_v55  ;;  %v1946_v63 = vadd.f32 %v1945_v61, %v1638_v56  ;;  %v4945_v56 = vld [vmem:[%s6241_s17 + $0x160] sm:$0xff]   ;;  %v1645_v61 = vsub.s32 4, %v5755_v46 }
0x1113   :  { %v1906_v11 = vpop.f32.mrf.mxu1  ;;  %v1947_v0 = vpop.f32.mrf.mxu0 }
0x1114   :  { %v1907_v2 = vadd.f32 %v1906_v11, %v1634_v57  ;;  %v1948_v3 = vadd.f32 %v1947_v0, %v1642_v58  ;;  %v2198_v6 = vmax.f32 %v1905_v62, 0.0  ;;  %v2200_v7 = vmax.f32 %v1946_v63, 0.0  ;;  %v4946_v57 = vld [vmem:[%s6241_s17 + $0x1e0] sm:$0xff]  }
0x1115   :  { %v1908_v8 = vpop.f32.mrf.mxu1  ;;  %v1949_v14 = vpop.f32.mrf.mxu0  ;;  %v4947_v62 = vld [vmem:[%s6241_s17 + $0x120] sm:$0xff]  }
0x1116   :  { %v2199_v9 = vmax.f32 %v1907_v2, 0.0  ;;  %v2201_v12 = vmax.f32 %v1948_v3, 0.0  ;;  %v2470_v37 = vpack.c.bf16 %v2198_v6, %v2198_v6  ;;  %v2472_v22 = vpack.c.bf16 %v2200_v7, %v2200_v7  ;;  %v4948_v63 = vld [vmem:[%s6241_s17 + $0x1a0] sm:$0xff]   ;;  %v4949_v2 = vld [vmem:[%s6241_s17 + $0x158] sm:$0xff]  }
0x1117   :  { %v1909_v13 = vpop.f32.mrf.mxu1  ;;  %v1950_v15 = vpop.f32.mrf.mxu0  ;;  %v4950_v3 = vld [vmem:[%s6241_s17 + $0x1d8] sm:$0xff]   ;;  %v1678_v6 = vrot.slane %v5761_v48, %v1645_v61 }
0x1118   :  { %v2471_v16 = vpack.c.bf16 %v2199_v9, %v2199_v9  ;;  %v2473_v17 = vpack.c.bf16 %v2201_v12, %v2201_v12  ;;  %v4951_v14 = vld [vmem:[%s6241_s17 + $0x118] sm:$0xff]   ;;  %v4953_v15 = vld [vmem:[%s6241_s17 + $0x150] sm:$0xff]  }
0x1119   :  { %v5803_v59 = vpop.f32.mrf.mxu1  ;;  %v5805_v10 = vpop.f32.mrf.mxu0  ;;  %v4952_v9 = vld [vmem:[%s6241_s17 + $0x198] sm:$0xff]  }
0x111a   :  { %3293 = vmatprep.mubr.bf16.mxu1 %v2471_v16  ;;  %3333 = vmatprep.mubr.bf16.mxu0 %v2473_v17  ;;  %v4954_v16 = vld [vmem:[%s6241_s17 + $0x1d0] sm:$0xff]  }
0x111b   :  { %v1988_v25 = vpop.f32.mrf.mxu1  ;;  %v2029_v26 = vpop.f32.mrf.mxu0  ;;  %3294 = vmatmul.mubr.bf16.vlgmr.msra.gmra.mxu1 %v2470_v37  ;;  %3334 = vmatmul.mubr.bf16.vlgmr.msra.gmra.mxu0 %v2472_v22  ;;  %v4956_v37 = vld [vmem:[%s6241_s17 + $0x190] sm:$0xff]   ;;  %v1646_v22 = vrot.slane %v5773_v52, %v1645_v61 }
0x111c   :  { %v1989_v27 = vadd.f32 %v1988_v25, %v1650_v18  ;;  %v2030_v28 = vadd.f32 %v2029_v26, %v1658_v19  ;;  %4493 = vmatpush3.bf16.msra.mxu1 %v4935_v20  ;;  %4515 = vmatpush3.bf16.msra.mxu0 %v4936_v21  ;;  %v4955_v21 = vld [vmem:[%s6241_s17 + $0x110] sm:$0xff]   ;;  %v4957_v25 = vld [vmem:[%s6241_s17 + $0x148] sm:$0xff]  }
0x111d   :  { %v1990_v31 = vpop.f32.mrf.mxu1  ;;  %v2031_v32 = vpop.f32.mrf.mxu0  ;;  %4494 = vmatprep.subr.bf16.mxu1 %v4937_v23  ;;  %4516 = vmatprep.subr.bf16.mxu0 %v4938_v24  ;;  %v4958_v26 = vld [vmem:[%s6241_s17 + $0x1c8] sm:$0xff]   ;;  %v4970_v61 = vld [vmem:[%s6241_s17 + $0x2f0] sm:$0xff]  }
0x111e   :  { %v2203_v36 = vmax.f32 %v1989_v27, 0.0  ;;  %v2205_v38 = vmax.f32 %v2030_v28, 0.0  ;;  %v1666_v27 = vrot.slane %v5761_v48, %v1633_v53  ;;  %v1987_v31 = vadd.f32 %v5803_v59, %v1646_v22  ;;  %v4962_v32 = vld [vmem:[%s6241_s17 + $0x1c0] sm:$0xff]   ;;  %v4987_v22 = vld [vmem:[%s6241_s17 + $0x210] sm:$0xff]  }
0x111f   :  { %v1991_v39 = vpop.f32.mrf.mxu1  ;;  %v2032_v40 = vpop.f32.mrf.mxu0  ;;  %v4963_v59 = vld [vmem:[%s6241_s17 + $0x100] sm:$0xff]  }
0x1120   :  { %v2475_v41 = vpack.c.bf16 %v2203_v36, %v2203_v36  ;;  %v2477_v42 = vpack.c.bf16 %v2205_v38, %v2205_v38  ;;  %4495 = vmatpush3.bf16.msra.mxu1 %v4939_v29  ;;  %4517 = vmatpush3.bf16.msra.mxu0 %v4940_v30  ;;  %v4959_v29 = vld [vmem:[%s6241_s17 + $0x108] sm:$0xff]   ;;  %v2202_v36 = vmax.f32 %v1987_v31, 0.0  ;;  %v4965_v39 = vld [vmem:[%s6241_s17 + $0x278] sm:$0xff]  }
0x1121   :  { %v5831_v45 = vpop.f32.mrf.mxu1  ;;  %v5833_v55 = vpop.f32.mrf.mxu0  ;;  %4496 = vmatprep.subr.bf16.mxu1 %v4941_v33  ;;  %4518 = vmatprep.subr.bf16.mxu0 %v4942_v35  ;;  %v4960_v30 = vld [vmem:[%s6241_s17 + $0x188] sm:$0xff]   ;;  %v4966_v40 = vld [vmem:[%s6241_s17 + $0x2f8] sm:$0xff]  }
0x1122   :  { %3373 = vmatprep.mubr.bf16.mxu1 %v2475_v41  ;;  %3413 = vmatprep.mubr.bf16.mxu0 %v2477_v42 }
0x1123   :  { %v2070_v58 = vpop.f32.mrf.mxu1  ;;  %v2111_v60 = vpop.f32.mrf.mxu0 }
0x1124   :  { %4497 = vmatpush3.bf16.msra.mxu1 %v4943_v43  ;;  %4519 = vmatpush3.bf16.msra.mxu0 %v4944_v44  ;;  %v2071_v33 = vadd.f32 %v2070_v58, %v1666_v27  ;;  %v4967_v43 = vld [vmem:[%s6241_s17 + $0x238] sm:$0xff]   ;;  %v2474_v44 = vpack.c.bf16 %v2202_v36, %v2202_v36  ;;  %v1690_v27 = vrot.slane %v5761_v48, %v1657_v5  ;;  %v5002_v36 = vld [vmem:[%s6241_s17 + $0x3f0] sm:$0xff]  }
0x1125   :  { %v2072_v11 = vpop.f32.mrf.mxu1  ;;  %v2113_v0 = vpop.f32.mrf.mxu0  ;;  %4498 = vmatprep.subr.bf16.mxu1 %v4945_v56  ;;  %4520 = vmatprep.subr.bf16.mxu0 %v4946_v57  ;;  %v4968_v57 = vld [vmem:[%s6241_s17 + $0x2b8] sm:$0xff]  }
0x1126   :  { %v2207_v41 = vmax.f32 %v2071_v33, 0.0  ;;  %v4972_v11 = vld [vmem:[%s6241_s17 + $0x2b0] sm:$0xff]   ;;  %v4973_v0 = vld [vmem:[%s6241_s17 + $0x268] sm:$0xff]   ;;  %v5000_v33 = vld [vmem:[%s6241_s17 + $0x3b8] sm:$0xff]  }
0x1127   :  { %v2073_v7 = vpop.f32.mrf.mxu1  ;;  %v2114_v8 = vpop.f32.mrf.mxu0 }
0x1128   :  { %4499 = vmatpush3.bf16.msra.mxu1 %v4947_v62  ;;  %4521 = vmatpush3.bf16.msra.mxu0 %v4948_v63  ;;  %v2479_v58 = vpack.c.bf16 %v2207_v41, %v2207_v41  ;;  %v4971_v63 = vld [vmem:[%s6241_s17 + $0x230] sm:$0xff]   ;;  %v4977_v7 = vld [vmem:[%s6241_s17 + $0x260] sm:$0xff]   ;;  %v5005_v41 = vld [vmem:[%s6241_s17 + $0x368] sm:$0xff]  }
0x1129   :  { %v2150_v12 = vpop.f32.mrf.mxu1  ;;  %v2191_v13 = vpop.f32.mrf.mxu0  ;;  %4500 = vmatprep.subr.bf16.mxu1 %v4949_v2  ;;  %4522 = vmatprep.subr.bf16.mxu0 %v4950_v3  ;;  %v4974_v2 = vld [vmem:[%s6241_s17 + $0x2e8] sm:$0xff]   ;;  %v4978_v8 = vld [vmem:[%s6241_s17 + $0x2e0] sm:$0xff]  }
0x112a   :  { %v5867_v17 = vadd.f32 %v2150_v12, %v1678_v6  ;;  %v5870_v18 = vadd.f32 %v2191_v13, %v5766_v49  ;;  %v1654_v49 = vrot.slane %v5773_v52, %v1653_v47  ;;  %v1674_v47 = vrot.slane %v5761_v48, %v1641_v54  ;;  %v4961_v54 = vld [vmem:[%s6241_s17 + $0x140] sm:$0xff]   ;;  %v4975_v3 = vld [vmem:[%s6241_s17 + $0x228] sm:$0xff]   ;;  %v4981_v12 = vld [vmem:[%s6241_s17 + $0x258] sm:$0xff]  }
0x112b   :  { %v5872_v19 = vpop.f32.mrf.mxu1  ;;  %v5874_v20 = vpop.f32.mrf.mxu0  ;;  %v4976_v6 = vld [vmem:[%s6241_s17 + $0x2a8] sm:$0xff]   ;;  %v4982_v13 = vld [vmem:[%s6241_s17 + $0x2d8] sm:$0xff]  }
0x112c   :  { %4501 = vmatpush3.bf16.msra.mxu1 %v4951_v14  ;;  %4523 = vmatpush3.bf16.msra.mxu0 %v4952_v9  ;;  %v2028_v53 = vadd.f32 %v5805_v10, %v1654_v49  ;;  %v2112_v35 = vadd.f32 %v2111_v60, %v1674_v47  ;;  %v4964_v10 = vld [vmem:[%s6241_s17 + $0x180] sm:$0xff]   ;;  %v4969_v60 = vld [vmem:[%s6241_s17 + $0x270] sm:$0xff]   ;;  %v1662_v49 = vrot.slane %v5761_v48, %v1629_v50  ;;  %v4991_v47 = vld [vmem:[%s6241_s17 + $0x208] sm:$0xff]  }
0x112d   :  { %v2154_v23 = vpop.f32.mrf.mxu1  ;;  %v2195_v24 = vpop.f32.mrf.mxu0  ;;  %4502 = vmatprep.subr.bf16.mxu1 %v4953_v15  ;;  %4524 = vmatprep.subr.bf16.mxu0 %v4954_v16  ;;  %v4979_v14 = vld [vmem:[%s6241_s17 + $0x220] sm:$0xff]   ;;  %v4983_v15 = vld [vmem:[%s6241_s17 + $0x218] sm:$0xff]   ;;  %v1682_v50 = vrot.slane %v5761_v48, %v1649_v4 }
0x112e   :  { %v2204_v38 = vmax.f32 %v2028_v53, 0.0  ;;  %v2209_v42 = vmax.f32 %v2112_v35, 0.0  ;;  %v4980_v9 = vld [vmem:[%s6241_s17 + $0x2a0] sm:$0xff]   ;;  %v4984_v16 = vld [vmem:[%s6241_s17 + $0x298] sm:$0xff]   ;;  %v4988_v23 = vld [vmem:[%s6241_s17 + $0x290] sm:$0xff]  }
0x112f   :  { %v2155_v52 = vpop.f32.mrf.mxu1  ;;  %v2196_v28 = vpop.f32.mrf.mxu0  ;;  %v4989_v24 = vld [vmem:[%s6241_s17 + $0x248] sm:$0xff]   ;;  %v4993_v4 = vld [vmem:[%s6241_s17 + $0x240] sm:$0xff]   ;;  %v2153_v5 = vadd.f32 %v5872_v19, %v1682_v50  ;;  %v4998_v19 = vld [vmem:[%s6241_s17 + $0x3f8] sm:$0xff]  }
0x1130   :  { %4503 = vmatpush3.bf16.msra.mxu1 %v4955_v21  ;;  %4525 = vmatpush3.bf16.msra.mxu0 %v4956_v37  ;;  %v2476_v56 = vpack.c.bf16 %v2204_v38, %v2204_v38  ;;  %v2481_v62 = vpack.c.bf16 %v2209_v42, %v2209_v42  ;;  %v4985_v21 = vld [vmem:[%s6241_s17 + $0x250] sm:$0xff]   ;;  %v4992_v52 = vld [vmem:[%s6241_s17 + $0x288] sm:$0xff]   ;;  %v4995_v28 = vld [vmem:[%s6241_s17 + $0x200] sm:$0xff]  }
0x1131   :  { %4504 = vmatprep.subr.bf16.mxu1 %v4957_v25  ;;  %4526 = vmatprep.subr.bf16.mxu0 %v4958_v26  ;;  %v4986_v37 = vld [vmem:[%s6241_s17 + $0x2d0] sm:$0xff]   ;;  %v1670_v25 = vrot.slane %v5761_v48, %v1637_v51  ;;  %v4990_v26 = vld [vmem:[%s6241_s17 + $0x2c8] sm:$0xff]   ;;  %v2069_v51 = vadd.f32 %v5831_v45, %v1662_v49  ;;  %v4994_v48 = vld [vmem:[%s6241_s17 + $0x2c0] sm:$0xff]   ;;  %v2194_v45 = vadd.f32 %v5874_v20, %v1690_v27  ;;  %v2211_v20 = vmax.f32 %v2153_v5, 0.0 }
0x1132   :  { %v5006_v42 = vld [vmem:[%s6241_s17 + $0x3e8] sm:$0xff]  }
0x1133   :  { %v2110_v46 = vadd.f32 %v5833_v55, %v1670_v25  ;;  %v4996_v55 = vld [vmem:[%s6241_s17 + $0x280] sm:$0xff]   ;;  %v2213_v53 = vmax.f32 %v2194_v45, 0.0 }
0x1134   :  { %4505 = vmatpush3.bf16.msra.mxu1 %v4959_v29  ;;  %4527 = vmatpush3.bf16.msra.mxu0 %v4960_v30  ;;  %v2206_v29 = vmax.f32 %v2069_v51, 0.0  ;;  %v4997_v30 = vld [vmem:[%s6241_s17 + $0x378] sm:$0xff]  }
0x1135   :  { %4506 = vmatprep.subr.bf16.mxu1 %v4961_v54  ;;  %4528 = vmatprep.subr.bf16.mxu0 %v4962_v32  ;;  %v2208_v31 = vmax.f32 %v2110_v46, 0.0  ;;  %v4999_v54 = vld [vmem:[%s6241_s17 + $0x338] sm:$0xff]   ;;  %v2485_v38 = vpack.c.bf16 %v2213_v53, %v2213_v53 }
0x1136   :  { %v2478_v32 = vpack.c.bf16 %v2206_v29, %v2206_v29 }
0x1137   :  { %v2480_v35 = vpack.c.bf16 %v2208_v31, %v2208_v31 }
0x1138   :  { %4507 = vmatpush3.bf16.msra.mxu1 %v4963_v59  ;;  %4529 = vmatpush3.bf16.msra.mxu0 %v4964_v10  ;;  %v5001_v59 = vld [vmem:[%s6241_s17 + $0x370] sm:$0xff]   ;;  %v2483_v10 = vpack.c.bf16 %v2211_v20, %v2211_v20 }
0x1139   :  { %4536 = vmatprep.subr.bf16.mxu1 %v4965_v39  ;;  %4558 = vmatprep.subr.bf16.mxu0 %v4966_v40  ;;  %v5003_v39 = vld [vmem:[%s6241_s17 + $0x330] sm:$0xff]  }
0x113a   :  { %v5004_v40 = vld [vmem:[%s6241_s17 + $0x3b0] sm:$0xff]  }
0x113b   :  { %3374 = vmatmul.mubr.bf16.vlgmr.msra.gmra.mxu1 %v2474_v44  ;;  %3414 = vmatmul.mubr.bf16.vlgmr.msra.gmra.mxu0 %v2476_v56  ;;  %v5008_v44 = vld [vmem:[%s6241_s17 + $0x3a8] sm:$0xff]   ;;  %v5009_v56 = vld [vmem:[%s6241_s17 + $0x360] sm:$0xff]  }
0x113c   :  { %4537 = vmatpush3.bf16.msra.mxu1 %v4967_v43  ;;  %3453 = vmatprep.mubr.bf16.mxu1 %v2479_v58  ;;  %v5007_v43 = vld [vmem:[%s6241_s17 + $0x328] sm:$0xff]   ;;  %v5011_v58 = vld [vmem:[%s6241_s17 + $0x320] sm:$0xff]  }
0x113d   :  { %4559 = vmatpush3.bf16.msra.mxu0 %v4968_v57  ;;  %3493 = vmatprep.mubr.bf16.mxu0 %v2481_v62  ;;  %v5010_v57 = vld [vmem:[%s6241_s17 + $0x3e0] sm:$0xff]   ;;  %v5014_v62 = vld [vmem:[%s6241_s17 + $0x3d8] sm:$0xff]  }
0x113e   :  { %4538 = vmatprep.subr.bf16.mxu1 %v4969_v60  ;;  %4560 = vmatprep.subr.bf16.mxu0 %v4970_v61  ;;  %v5012_v60 = vld [vmem:[%s6241_s17 + $0x3a0] sm:$0xff]   ;;  %v5013_v61 = vld [vmem:[%s6241_s17 + $0x358] sm:$0xff]  }
0x1140   :  { %4539 = vmatpush3.bf16.msra.mxu1 %v4971_v63  ;;  %v5015_v63 = vld [vmem:[%s6241_s17 + $0x318] sm:$0xff]  }
0x1141   :  { %4561 = vmatpush3.bf16.msra.mxu0 %v4972_v11  ;;  %4540 = vmatprep.subr.bf16.mxu1 %v4973_v0  ;;  %v5016_v11 = vld [vmem:[%s6241_s17 + $0x398] sm:$0xff]   ;;  %v5017_v0 = vld [vmem:[%s6241_s17 + $0x350] sm:$0xff]  }
0x1142   :  { %4562 = vmatprep.subr.bf16.mxu0 %v4974_v2  ;;  %v5018_v2 = vld [vmem:[%s6241_s17 + $0x3d0] sm:$0xff]  }
0x1144   :  { %4541 = vmatpush3.bf16.msra.mxu1 %v4975_v3  ;;  %v5019_v3 = vld [vmem:[%s6241_s17 + $0x310] sm:$0xff]  }
0x1145   :  { %4563 = vmatpush3.bf16.msra.mxu0 %v4976_v6  ;;  %4542 = vmatprep.subr.bf16.mxu1 %v4977_v7  ;;  %v5020_v6 = vld [vmem:[%s6241_s17 + $0x390] sm:$0xff]   ;;  %v5021_v7 = vld [vmem:[%s6241_s17 + $0x348] sm:$0xff]  }
0x1146   :  { %4564 = vmatprep.subr.bf16.mxu0 %v4978_v8  ;;  %v5022_v8 = vld [vmem:[%s6241_s17 + $0x3c8] sm:$0xff]  }
0x1148   :  { %4543 = vmatpush3.bf16.msra.mxu1 %v4979_v14  ;;  %v5023_v14 = vld [vmem:[%s6241_s17 + $0x308] sm:$0xff]  }
0x1149   :  { %4565 = vmatpush3.bf16.msra.mxu0 %v4980_v9  ;;  %4544 = vmatprep.subr.bf16.mxu1 %v4981_v12  ;;  %v5024_v9 = vld [vmem:[%s6241_s17 + $0x388] sm:$0xff]   ;;  %v5025_v12 = vld [vmem:[%s6241_s17 + $0x340] sm:$0xff]  }
0x114a   :  { %4566 = vmatprep.subr.bf16.mxu0 %v4982_v13  ;;  %v5026_v13 = vld [vmem:[%s6241_s17 + $0x3c0] sm:$0xff]  }
0x114c   :  { %4545 = vmatpush3.bf16.msra.mxu1 %v4983_v15  ;;  %v5027_v15 = vld [vmem:[%s6241_s17 + $0x300] sm:$0xff]  }
0x114d   :  { %4567 = vmatpush3.bf16.msra.mxu0 %v4984_v16  ;;  %4546 = vmatprep.subr.bf16.mxu1 %v4985_v21  ;;  %v2210_v16 = vmax.f32 %v5867_v17, 0.0  ;;  %v5028_v21 = vld [vmem:[%s6241_s17 + $0x380] sm:$0xff]  }
0x114e   :  { %4568 = vmatprep.subr.bf16.mxu0 %v4986_v37  ;;  %v2212_v37 = vmax.f32 %v5870_v18, 0.0  ;;  %v4219_v18 = vld [vmem:[%s6242_s18] ss:$0 sm:$0xff] }
0x1150   :  { %4547 = vmatpush3.bf16.msra.mxu1 %v4987_v22  ;;  %v2482_v22 = vpack.c.bf16 %v2210_v16, %v2210_v16  ;;  %v2484_v49 = vpack.c.bf16 %v2212_v37, %v2212_v37  ;;  %v5030_v16 = vld [vmem:[%s6243_s19 + $0x18] sm:$0xff]  }
0x1151   :  { %4569 = vmatpush3.bf16.msra.mxu0 %v4988_v23  ;;  %4548 = vmatprep.subr.bf16.mxu1 %v4989_v24 }
0x1152   :  { %4570 = vmatprep.subr.bf16.mxu0 %v4990_v26 }
0x1154   :  { %4549 = vmatpush3.bf16.msra.mxu1 %v4991_v47 }
0x1155   :  { %4571 = vmatpush3.bf16.msra.mxu0 %v4992_v52  ;;  %4550 = vmatprep.subr.bf16.mxu1 %v4993_v4 }
0x1156   :  { %4572 = vmatprep.subr.bf16.mxu0 %v4994_v48 }
0x1158   :  { %4551 = vmatpush3.bf16.msra.mxu1 %v4995_v28 }
0x1159   :  { %4573 = vmatpush3.bf16.msra.mxu0 %v4996_v55  ;;  %4580 = vmatprep.subr.bf16.mxu1 %v4997_v30 }
0x115a   :  { %4602 = vmatprep.subr.bf16.mxu0 %v4998_v19 }
0x115b   :  { %3454 = vmatmul.mubr.bf16.vlgmr.msra.gmra.mxu1 %v2478_v32 }
0x115c   :  { %3494 = vmatmul.mubr.bf16.vlgmr.msra.gmra.mxu0 %v2480_v35  ;;  %4581 = vmatpush3.bf16.msra.mxu1 %v4999_v54 }
0x115d   :  { %3533 = vmatprep.mubr.bf16.mxu1 %v2483_v10  ;;  %4603 = vmatpush3.bf16.msra.mxu0 %v5000_v33 }
0x115e   :  { %3573 = vmatprep.mubr.bf16.mxu0 %v2485_v38  ;;  %4582 = vmatprep.subr.bf16.mxu1 %v5001_v59 }
0x115f   :  { %4604 = vmatprep.subr.bf16.mxu0 %v5002_v36 }
0x1160   :  { %4583 = vmatpush3.bf16.msra.mxu1 %v5003_v39 }
0x1161   :  { %4605 = vmatpush3.bf16.msra.mxu0 %v5004_v40  ;;  %4584 = vmatprep.subr.bf16.mxu1 %v5005_v41 }
0x1162   :  { %4606 = vmatprep.subr.bf16.mxu0 %v5006_v42 }
0x1164   :  { %4585 = vmatpush3.bf16.msra.mxu1 %v5007_v43 }
0x1165   :  { %4607 = vmatpush3.bf16.msra.mxu0 %v5008_v44  ;;  %4586 = vmatprep.subr.bf16.mxu1 %v5009_v56 }
0x1166   :  { %4608 = vmatprep.subr.bf16.mxu0 %v5010_v57 }
0x1168   :  { %4587 = vmatpush3.bf16.msra.mxu1 %v5011_v58 }
0x1169   :  { %4609 = vmatpush3.bf16.msra.mxu0 %v5012_v60  ;;  %4588 = vmatprep.subr.bf16.mxu1 %v5013_v61 }
0x116a   :  { %4610 = vmatprep.subr.bf16.mxu0 %v5014_v62 }
0x116c   :  { %4589 = vmatpush3.bf16.msra.mxu1 %v5015_v63 }
0x116d   :  { %4611 = vmatpush3.bf16.msra.mxu0 %v5016_v11  ;;  %4590 = vmatprep.subr.bf16.mxu1 %v5017_v0 }
0x116e   :  { %4612 = vmatprep.subr.bf16.mxu0 %v5018_v2 }
0x1170   :  { %4591 = vmatpush3.bf16.msra.mxu1 %v5019_v3 }
0x1171   :  { %4613 = vmatpush3.bf16.msra.mxu0 %v5020_v6  ;;  %4592 = vmatprep.subr.bf16.mxu1 %v5021_v7 }
0x1172   :  { %4614 = vmatprep.subr.bf16.mxu0 %v5022_v8 }
0x1174   :  { %4593 = vmatpush3.bf16.msra.mxu1 %v5023_v14 }
0x1175   :  { %4615 = vmatpush3.bf16.msra.mxu0 %v5024_v9  ;;  %4594 = vmatprep.subr.bf16.mxu1 %v5025_v12 }
0x1176   :  { %4616 = vmatprep.subr.bf16.mxu0 %v5026_v13 }
0x1178   :  { %4595 = vmatpush3.bf16.msra.mxu1 %v5027_v15  ;;  %v5029_v15 = vld [vmem:[%s6243_s19 + $0x8] sm:$0xff]  }
0x1179   :  { %4617 = vmatpush3.bf16.msra.mxu0 %v5028_v21  ;;  %4818 = vmatprep.subr.bf16.mxu1 %v5092_v1  ;;  %v5032_v21 = vld [vmem:[%s6243_s19 + $0x10] sm:$0xff]  }
0x117a   :  { %4826 = vmatprep.subr.bf16.mxu0 %v5092_v1 }
0x117b   :  { %3534 = vmatmul.mubr.bf16.vlgmr.msra.gmra.mxu1 %v2482_v22 }
0x117c   :  { %3574 = vmatmul.mubr.bf16.vlgmr.msra.gmra.mxu0 %v2484_v49  ;;  %4822 = vmatprep.mubr.msk.bf16.mxu1 %vm5093_vm2, %v5092_v1 }
0x117d   :  { %4830 = vmatprep.mubr.msk.bf16.mxu0 %vm5093_vm2, %v5092_v1  ;;  %4819 = vmatpush3.bf16.msra.mxu1 %v5029_v15 }
0x117e   :  { %4827 = vmatpush3.bf16.msra.mxu0 %v5030_v16  ;;  %4820 = vmatprep.subr.bf16.mxu1 %v5092_v1 }
0x117f   :  { %4828 = vmatprep.subr.bf16.mxu0 %v5092_v1 }
0x1182   :  { %4829 = vmatpush3.bf16.msra.mxu0 %v5032_v21 }
0x1183   :  { %4842 = vmatprep.subr.bf16.mxu0 %v5092_v1 }
0x11db   :  { %v4464_v17 = vpop.f32.mrf.mxu1  ;;  %v4486_v23 = vpop.f32.mrf.mxu0 }
0x11dd   :  { %v4465_v24 = vpop.f32.mrf.mxu1  ;;  %v4487_v25 = vpop.f32.mrf.mxu0 }
0x11de   :  { %v4466_v26 = vadd.f32 %v4465_v24, %v4464_v17  ;;  %v4488_v50 = vadd.f32 %v4487_v25, %v4486_v23  ;;  %v4348_v23 = vld [vmem:[%s6237_s13] ss:$0 sm:$0xff] }
0x11df   :  { %v4467_v27 = vpop.f32.mrf.mxu1  ;;  %v4489_v47 = vpop.f32.mrf.mxu0  ;;  %v4349_v24 = vld [vmem:[%s6238_s14] ss:$0 sm:$0xff] }
0x11e0   :  { %v3296_v51 = vadd.f32 %v4466_v26, %v4219_v18  ;;  %v5034_v47 = vld [vmem:[%s6243_s19 + $0x38] sm:$0xff]  }
0x11e1   :  { %v4468_v52 = vpop.f32.mrf.mxu1  ;;  %v4490_v4 = vpop.f32.mrf.mxu0 }
0x11e2   :  { %v3336_v46 = vadd.f32 %v4488_v50, %v3296_v51  ;;  %v5033_v50 = vld [vmem:[%s6243_s19 + $0x28] sm:$0xff]   ;;  %v5035_v52 = vld [vmem:[%s6243_s19 + $0x20] sm:$0xff]   ;;  %v5036_v4 = vld [vmem:[%s6243_s19 + $0x30] sm:$0xff]  }
0x11fb   :  { %v4508_v48 = vpop.f32.mrf.mxu1  ;;  %v4530_v5 = vpop.f32.mrf.mxu0 }
0x11fd   :  { %v4509_v45 = vpop.f32.mrf.mxu1  ;;  %v4531_v28 = vpop.f32.mrf.mxu0 }
0x11fe   :  { %v4510_v10 = vadd.f32 %v4509_v45, %v4508_v48  ;;  %v4532_v38 = vadd.f32 %v4531_v28, %v4530_v5  ;;  %v5038_v45 = vld [vmem:[%s6243_s19 + $0x40] sm:$0xff]  }
0x11ff   :  { %v4511_v29 = vpop.f32.mrf.mxu1  ;;  %v4533_v55 = vpop.f32.mrf.mxu0 }
0x1200   :  { %v3376_v36 = vadd.f32 %v4510_v10, %v3336_v46  ;;  %v5037_v46 = vld [vmem:[%s6243_s19 + $0x48] sm:$0xff]   ;;  %v5040_v55 = vld [vmem:[%s6245_s21] sm:$0xff]  }
0x1201   :  { %v4512_v30 = vpop.f32.mrf.mxu1  ;;  %v4534_v31 = vpop.f32.mrf.mxu0  ;;  %v5039_v29 = vld [vmem:[%s6245_s21 + $0x8] sm:$0xff]  }
0x1202   :  { %v3416_v40 = vadd.f32 %v4532_v38, %v3376_v36  ;;  %v3611_v31 = vld [vmem:[%s6244_s20] sm:$0x1] }
0x121b   :  { %v4552_v19 = vpop.f32.mrf.mxu1 }
0x121c   :  { %v4574_v20 = vpop.f32.mrf.mxu0 }
0x121d   :  { %v4553_v53 = vpop.f32.mrf.mxu1 }
0x121e   :  { %v4575_v54 = vpop.f32.mrf.mxu0  ;;  %v4554_v39 = vadd.f32 %v4553_v53, %v4552_v19 }
0x121f   :  { %v4555_v32 = vpop.f32.mrf.mxu1  ;;  %v4576_v43 = vadd.f32 %v4575_v54, %v4574_v20 }
0x1220   :  { %v4577_v33 = vpop.f32.mrf.mxu0  ;;  %v3456_v41 = vadd.f32 %v4554_v39, %v3416_v40 }
0x1221   :  { %v4556_v35 = vpop.f32.mrf.mxu1 }
0x1222   :  { %v4578_v59 = vpop.f32.mrf.mxu0  ;;  %v3496_v57 = vadd.f32 %v4576_v43, %v3456_v41 }
0x123b   :  { %v4596_v42 = vpop.f32.mrf.mxu1 }
0x123c   :  { %v4618_v44 = vpop.f32.mrf.mxu0 }
0x123d   :  { %v4597_v56 = vpop.f32.mrf.mxu1 }
0x123e   :  { %v4598_v58 = vadd.f32 %v4597_v56, %v4596_v42  ;;  %v4619_v60 = vpop.f32.mrf.mxu0 }
0x123f   :  { %v4599_v61 = vpop.f32.mrf.mxu1  ;;  %v4620_v63 = vadd.f32 %v4619_v60, %v4618_v44 }
0x1240   :  { %v3536_v62 = vadd.f32 %v4598_v58, %v3496_v57  ;;  %v4621_v11 = vpop.f32.mrf.mxu0 }
0x1241   :  { %v4600_v0 = vpop.f32.mrf.mxu1 }
0x1242   :  { %v3576_v2 = vadd.f32 %v4620_v63, %v3536_v62  ;;  %v4622_v3 = vpop.f32.mrf.mxu0 }
0x1244   :  { %v3581_v6 = vadd.f32 %v3576_v2, %v5577_v34  ;;  %v5031_v34 = vld [vmem:[%s6243_s19] sm:$0xff]  }
0x1245   :  { %4821 = vmatpush3.bf16.msra.mxu1 %v5031_v34 }
0x1246   :  { %v3584_v7 = vsel %vm1561_vm8, %v3581_v6, 0.0  ;;  %4834 = vmatprep.subr.bf16.mxu1 %v5092_v1 }
0x1247   :  { %3585 = vadd.xlane.f32.xlu0 %v3584_v7 }
0x12d0   :  { %v3586_v8 = vpop.xlane.xlu0 %3585 }
0x12d1   :  { %v3587_v14 = vmul.f32 0.03125, %v3586_v8  ;;  %v5041_v8 = vld [vmem:[%s6247_s23] sm:$0xff]  }
0x12d3   :  { %v3588_v9 = vsub.f32 %v3581_v6, %v3587_v14  ;;  %v3934_v14 = vld [vmem:[%s6246_s22] sm:$0x1]  ;;  %s5096_s22 = smov [#allocation2]  }
0x12d4   :  { %s4058_s9 = sshll.u32 %s5096_s22, 4  ;;  %s4059_s9 = int_to_ptr.vmem [resolvable:$true] %s4058_s9 }
0x12d5   :  { %v3589_v12 = vmul.f32 %v3588_v9, %v3588_v9  ;;  %s5070_s0 = scalar_lea.vmem %s4059_s9, 16  ;;  %s5074_s7 = scalar_lea.vmem %s4059_s9, 32 }
0x12d6   :  { %p5071_p0 = scmp.ne.s32.totalorder %s4059_s9, %s5070_s0  ;;  %p5075_p1 = scmp.lt.s32.totalorder %s4059_s9, %s4059_s9 }
0x12d7   :  { %v3590_v13 = vsel %vm1561_vm8, %v3589_v12, 0.0  ;;  %p5076_p2 = scmp.lt.s32.totalorder %s5074_s7, %s5070_s0 }
0x12d8   :  { %3591 = vadd.xlane.f32.xlu1 %v3590_v13 }
0x12d9   :  { %p5077_p3 = por %p5076_p2, %p5075_p1 }
0x12db   :  { %p5078_p4 = pnand %p5077_p3, %p5071_p0 }
0x1361   :  { %v3592_v37 = vpop.xlane.xlu1 %3591 }
0x1362   :  { %v3593_v22 = vmul.f32 0.03125, %v3592_v37 }
0x1364   :  { %v3594_v49 = vadd.f32 1e-05, %v3593_v22 }
0x1366   :  { %5060 = vrsqrt.f32 %v3594_v49 }
0x1373   :  { %v5061_v17 = vpop.eup %5060 }
0x1374   :  { %v3596_v18 = vmul.f32 %v5061_v17, %v3588_v9 }
0x1376   :  { %v3603_v25 = vmul.f32 %v4348_v23, %v3596_v18  ;;  %v3999_v18 = vld [vmem:[%s6248_s24] sm:$0x1] }
0x1378   :  { %v3610_v26 = vadd.f32 %v4349_v24, %v3603_v25 }
0x137a   :  { %v3616_v27 = vpack.c.bf16 %v3610_v26, %v3610_v26 }
0x137c   :  { %4823 = vmatmul.mubr.msk.bf16.vlgmr.msra.gmra.mxu1 %vm164_vm3, %v3616_v27  ;;  %v3678_v51 = vshrl.u32 %v3616_v27, 16  ;;  %v3742_v48 = vrot.slane %v3616_v27, 1  ;;  %v3866_v28 = vrot.slane %v3616_v27, 2 }
0x137d   :  { %4835 = vmatpush3.bf16.msra.mxu1 %v5033_v50  ;;  %4838 = vmatprep.mubr.msk.bf16.mxu1 %vm5093_vm2, %v5092_v1 }
0x137e   :  { %4831 = vmatmul.mubr.msk.bf16.vlgmr.msra.gmra.mxu0 %vm164_vm3, %v3678_v51  ;;  %4836 = vmatprep.subr.bf16.mxu1 %v5092_v1  ;;  %v3804_v5 = vrot.slane %v3678_v51, 1 }
0x137f   :  { %4843 = vmatpush3.bf16.msra.mxu0 %v5034_v47  ;;  %4846 = vmatprep.mubr.msk.bf16.mxu0 %vm5093_vm2, %v5092_v1 }
0x1380   :  { %4844 = vmatprep.subr.bf16.mxu0 %v5092_v1 }
0x1381   :  { %4837 = vmatpush3.bf16.msra.mxu1 %v5035_v52 }
0x1382   :  { %4850 = vmatprep.subr.bf16.mxu1 %v5092_v1 }
0x1383   :  { %4845 = vmatpush3.bf16.msra.mxu0 %v5036_v4 }
0x1384   :  { %4839 = vmatmul.mubr.msk.bf16.vlgmr.msra.gmra.mxu1 %vm164_vm3, %v3742_v48  ;;  %4858 = vmatprep.subr.bf16.mxu0 %v5092_v1 }
0x1385   :  { %4851 = vmatpush3.bf16.msra.mxu1 %v5037_v46  ;;  %4854 = vmatprep.mubr.msk.bf16.mxu1 %vm5093_vm2, %v5092_v1 }
0x1386   :  { %4847 = vmatmul.mubr.msk.bf16.vlgmr.msra.gmra.mxu0 %vm164_vm3, %v3804_v5  ;;  %4852 = vmatprep.subr.bf16.mxu1 %v5092_v1 }
0x1387   :  { %4862 = vmatprep.mubr.msk.bf16.mxu0 %vm5093_vm2, %v5092_v1  ;;  %4859 = vmatpush3.bf16.msra.mxu0 %v5039_v29 }
0x1388   :  { %4860 = vmatprep.subr.bf16.mxu0 %v5092_v1 }
0x1389   :  { %4853 = vmatpush3.bf16.msra.mxu1 %v5038_v45 }
0x138a   :  { %4866 = vmatprep.subr.bf16.mxu1 %v5092_v1 }
0x138b   :  { %4861 = vmatpush3.bf16.msra.mxu0 %v5040_v55 }
0x138c   :  { %4855 = vmatmul.mubr.msk.bf16.vlgmr.msra.gmra.mxu1 %vm164_vm3, %v3866_v28 }
0x138d   :  { %4868 = vmatprep.mubr.msk.bf16.mxu1 %vm5093_vm2, %v5092_v1  ;;  %4867 = vmatpush3.bf16.msra.mxu1 %v5041_v8 }
0x143c   :  { %v3666_v30 = vpop.f32.mrf.mxu1 }
0x143d   :  { %v3672_v32 = vadd.f32 %v3666_v30, %v3611_v31 }
0x143e   :  { %v4824_v19 = vpop.f32.mrf.mxu1  ;;  %v3729_v20 = vpop.f32.mrf.mxu0 }
0x143f   :  { %v3735_v1 = vadd.f32 %v3729_v20, %v3672_v32 }
0x1440   :  { %v3669_v53 = vpop.f32.mrf.mxu1  ;;  %v4832_v54 = vpop.f32.mrf.mxu0 }
0x1442   :  { %v4825_v33 = vpop.f32.mrf.mxu1  ;;  %v3732_v35 = vpop.f32.mrf.mxu0 }
0x1444   :  { %v4833_v59 = vpop.f32.mrf.mxu0  ;;  %v3792_v10 = vpop.f32.mrf.mxu1 }
0x1445   :  { %v3798_v39 = vadd.f32 %v3792_v10, %v3735_v1 }
0x1446   :  { %v4840_v36 = vpop.f32.mrf.mxu1  ;;  %v3854_v38 = vpop.f32.mrf.mxu0 }
0x1447   :  { %v3860_v44 = vadd.f32 %v3854_v38, %v3798_v39 }
0x1448   :  { %v3795_v40 = vpop.f32.mrf.mxu1  ;;  %v4848_v41 = vpop.f32.mrf.mxu0 }
0x144a   :  { %v4841_v42 = vpop.f32.mrf.mxu1  ;;  %v3857_v43 = vpop.f32.mrf.mxu0 }
0x144c   :  { %v4849_v56 = vpop.f32.mrf.mxu0  ;;  %v3916_v57 = vpop.f32.mrf.mxu1 }
0x144d   :  { %v3922_v58 = vadd.f32 %v3916_v57, %v3860_v44 }
0x144e   :  { %v4856_v60 = vpop.f32.mrf.mxu1 }
0x144f   :  { %v3923_v61 = vsub.f32 0.0, %v3922_v58 }
0x1450   :  { %v3919_v62 = vpop.f32.mrf.mxu1 }
0x1451   :  { %v3924_v63 = vmul.f32 1.442695, %v3923_v61 }
0x1452   :  { %v4857_v11 = vpop.f32.mrf.mxu1 }
0x1453   :  { %5062 = vpow2.f32 %v3924_v63 }
0x1460   :  { %v5063_v0 = vpop.eup %5062 }
0x1461   :  { %v3926_v2 = vadd.f32 1.0, %v5063_v0 }
0x1463   :  { %5064 = vrcp.f32 %v3926_v2 }
0x1470   :  { %v5065_v3 = vpop.eup %5064 }
0x1471   :  { %v3928_v6 = vmul.f32 %v5065_v3, %v3922_v58 }
0x1473   :  { %v3933_v7 = vpack.c.bf16 %v3928_v6, %v3928_v6 }
0x1475   :  { %4863 = vmatmul.mubr.msk.bf16.vlgmr.msra.gmra.mxu0 %vm164_vm3, %v3933_v7 }
0x1535   :  { %v3984_v9 = vpop.f32.mrf.mxu0 }
0x1536   :  { %v3985_v12 = vadd.f32 %v3984_v9, %v3934_v14 }
0x1537   :  { %v4864_v13 = vpop.f32.mrf.mxu0 }
0x1538   :  { %v3990_v15 = vsub.f32 0.0, %v3985_v12 }
0x1539   :  { %v3987_v16 = vpop.f32.mrf.mxu0 }
0x153a   :  { %v3991_v34 = vmul.f32 1.442695, %v3990_v15 }
0x153b   :  { %v4865_v21 = vpop.f32.mrf.mxu0 }
0x153c   :  { %5066 = vpow2.f32 %v3991_v34 }
0x1549   :  { %v5067_v37 = vpop.eup %5066 }
0x154a   :  { %v3993_v22 = vadd.f32 1.0, %v5067_v37 }
0x154c   :  { %5068 = vrcp.f32 %v3993_v22 }
0x1559   :  { %v5069_v49 = vpop.eup %5068 }
0x155a   :  { %v3995_v17 = vmul.f32 %v5069_v49, %v3985_v12 }
0x155c   :  { %v3998_v23 = vpack.c.bf16 %v3995_v17, %v3995_v17 }
0x155e   :  { %4869 = vmatmul.mubr.msk.bf16.vlgmr.msra.gmra.mxu1 %vm4006_vm9, %v3998_v23 }
0x161e   :  { %v4044_v24 = vpop.f32.mrf.mxu1 }
0x161f   :  { %v4045_v25 = vadd.f32 %v4044_v24, %v3999_v18 }
0x1620   :  { %v4870_v26 = vpop.f32.mrf.mxu1 }
0x1621   :  { %4051 = vst.msk [vmem:[#allocation2] sm:$0x1] %vm4050_vm10, %v4045_v25 }
0x1622   :  { %v4047_v50 = vpop.f32.mrf.mxu1 }
0x1623   :  { %5081 = shalt.err (!%p5078_p4)
}
0x1624   :  { %4061 = dma.vmem_to_hbm [thread:$0]  %s4059_s9, 16, %s6249_s25, [#allocation3]   ;;  %v4871_v27 = vpop.f32.mrf.mxu1 }
0x1625   :  { %5090 = dma.done.wait [#allocation3], 16  }
0x1626   :  { %5091 = vsyncadd [#allocation3], 4294967280 }
0x1627   :  { %4065 = vsyncpa [#allocation3], 1 }

</bundles_post_ra>
